<compile_context>
chip_gen: v6e
topology: v6e:2x2x1
jax: 0.10.0
libtpu: 0.0.40
codegen_flags: <defaults>
</compile_context>

<pallas_src>
import functools

import jax
import jax.numpy as jnp
from jax import lax
from jax.experimental import pallas as pl
from jax.experimental.pallas import tpu as pltpu


def graph_undirected_topk_kernel(nv_ref, nvT_ref, o_ref, *,
                                 k: int, n_valid: int, alpha: float):
    # nv_ref : (TM, dim)    rows of nodevec for this tile
    # nvT_ref: (dim, Npad)  nodevec transposed (all columns), grid-invariant
    a = jnp.dot(nv_ref[...], nvT_ref[...],
                preferred_element_type=jnp.float32)          # (TM, Npad)
    adj = jnp.maximum(jnp.tanh(alpha * a), 0.0)              # relu(tanh(alpha * a))

    tm, npad = adj.shape
    # Hoisted: one full (TM, Npad) column-index slab, reused by all k rounds.
    col = lax.broadcasted_iota(jnp.int32, (tm, npad), 1)

    # Exclude zero-padded columns from selection (all real entries are >= 0 > -1).
    work = jnp.where(col < n_valid, adj, -1.0)
    mask = jnp.zeros((tm, npad), dtype=jnp.bool_)

    # Top-k per row: k unrolled rounds of (row max -> lowest column among maxima ->
    # mark in boolean mask -> remove).  Exactly k entries per row; ties go to the
    # lowest column, matching lax.top_k (and the torch scatter of ones).
    for _ in range(k):
        row_max = jnp.max(work, axis=1, keepdims=True)                   # (TM, 1)
        is_max = work == row_max
        first_col = jnp.min(jnp.where(is_max, col, npad),
                            axis=1, keepdims=True)                       # (TM, 1)
        sel = col == first_col                                           # (TM, Npad)
        mask = jnp.logical_or(mask, sel)
        work = jnp.where(sel, -2.0, work)

    o_ref[...] = jnp.where(mask, adj, 0.0)


def _round_up(x: int, m: int) -> int:
    return ((x + m - 1) // m) * m


def graph_undirected_forward(idx, emb_weight, lin1_weight, lin1_bias, *,
                             k, alpha=3.0, tm=256):
    # Embedding gather is glue (data-dependent row pick) done in plain JAX.
    x = emb_weight[idx].astype(jnp.float32)                  # (N, dim)
    n, dim = x.shape
    if k > n:
        raise ValueError("k must be <= number of nodes")

    # Pad N to a lane-dense multiple of 128 (single round-up; no Npad inflation).
    npad = _round_up(n, 128)

    # tm: a 128-multiple divisor of Npad, at most the requested tile.
    tm = max(128, (int(tm) // 128) * 128)
    tm = min(tm, npad)
    while npad % tm != 0:
        tm -= 128                                           # terminates at 128 | npad
    # Guarantee >= 2 grid steps where possible so the "parallel" axis can shard
    # across both TensorCores on v7x (one idle TC otherwise).
    if npad // tm < 2 and npad >= 256:
        tm = npad // 2

    # Hoisted nodevec: computed ONCE here (not per grid step inside the kernel).
    w_t = lin1_weight.T.astype(jnp.float32)                  # (dim, dim)
    b = lin1_bias.reshape(1, -1).astype(jnp.float32)         # (1, dim)
    nv = jnp.tanh(alpha * (x @ w_t + b))                     # (N, dim)
    nv_pad = jnp.zeros((npad, dim), jnp.float32).at[:n].set(nv)
    nvT = nv_pad.T                                           # (dim, Npad), one-time transpose

    kern = functools.partial(graph_undirected_topk_kernel,
                             k=int(k), n_valid=int(n), alpha=float(alpha))

    out = pl.pallas_call(
        kern,
        out_shape=jax.ShapeDtypeStruct((npad, npad), jnp.float32),
        grid_spec=pltpu.PrefetchScalarGridSpec(
            num_scalar_prefetch=0,
            grid=(npad // tm,),
            in_specs=[
                pl.BlockSpec((tm, dim), lambda i: (i, 0)),      # nodevec rows of this tile
                pl.BlockSpec((dim, npad), lambda i: (0, 0)),    # nvT, grid-invariant
            ],
            out_specs=pl.BlockSpec((tm, npad), lambda i: (i, 0)),  # lane-dense out slab
        ),
        compiler_params=pltpu.CompilerParams(
            dimension_semantics=("parallel",),        # row-tile axis shards on v7x megacore
            vmem_limit_bytes=48 * 1024 * 1024,        # fits v7x 64 MiB; headroom on v5e/v6e
        ),
    )(nv_pad, nvT)

    if npad == n:
        return out
    return out[:n, :n]


def _reference(idx, emb_weight, lin1_weight, lin1_bias, k, alpha):
    x = emb_weight[idx]
    nv = jnp.tanh(alpha * (x @ lin1_weight.T + lin1_bias))
    a = nv @ nv.T
    adj = jax.nn.relu(jnp.tanh(alpha * a))
    _, inds = lax.top_k(adj, k)
    mask = jnp.zeros_like(adj).at[jnp.arange(adj.shape[0])[:, None], inds].set(1.0)
    return adj * mask


if __name__ == "__main__":
    nnodes, k, dim, alpha = 16, 4, 32, 3.0

    key = jax.random.PRNGKey(0)
    k1, k2, k3 = jax.random.split(key, 3)
    # nn.Embedding default init ~ N(0, 1); nn.Linear default init ~ U(-1/sqrt(fan_in), +)
    emb_weight = jax.random.normal(k1, (nnodes, dim), jnp.float32)
    bound = 1.0 / (dim ** 0.5)
    lin1_weight = jax.random.uniform(k2, (dim, dim), jnp.float32, -bound, bound)
    lin1_bias = jax.random.uniform(k3, (dim,), jnp.float32, -bound, bound)

    idx = jnp.arange(nnodes, dtype=jnp.int32)

    adj = graph_undirected_forward(
        idx, emb_weight, lin1_weight, lin1_bias, k=k, alpha=alpha
    )
    jax.block_until_ready(adj)

    ref = _reference(idx, emb_weight, lin1_weight, lin1_bias, k, alpha)
    assert adj.shape == (nnodes, nnodes)
    assert jnp.allclose(adj, ref, atol=1e-5, rtol=1e-5), "mismatch vs JAX reference"

    print("KERNEL_OK")
</pallas_src>

<mosaic_0001>
module attributes {stable_mosaic.version = 11 : i64} {
  func.func @graph_undirected_topk_kernel(%arg0: i32, %arg1: memref<128x32xf32, #tpu.memory_space<vmem>>, %arg2: memref<32x128xf32, #tpu.memory_space<vmem>>, %arg3: memref<128x128xf32, #tpu.memory_space<vmem>>) attributes {dimension_semantics = [#tpu.dimension_semantics<parallel>], iteration_bounds = array<i64: 1>, scalar_prefetch = 0 : i64, scratch_operands = 0 : i64, tpu.core_type = #tpu.core_type<tc>, window_params = [{transform_indices = @transform_0, window_bounds = array<i64: 128, 32>}, {pipeline_mode = #tpu.pipeline_mode<synchronous>, transform_indices = @transform_1, window_bounds = array<i64: 32, 128>}, {transform_indices = @transform_2, window_bounds = array<i64: 128, 128>}]} {
    %c0 = arith.constant 0 : index
    %c0_0 = arith.constant 0 : index
    %0 = vector.load %arg1[%c0, %c0_0] : memref<128x32xf32, #tpu.memory_space<vmem>>, vector<128x32xf32>
    %c0_1 = arith.constant 0 : index
    %c0_2 = arith.constant 0 : index
    %1 = vector.load %arg2[%c0_1, %c0_2] : memref<32x128xf32, #tpu.memory_space<vmem>>, vector<32x128xf32>
    %cst = arith.constant dense<0.000000e+00> : vector<128x128xf32>
    %2 = tpu.matmul %0, %1, %cst {dimension_numbers = #tpu.dot_dimension_numbers<[1], [0], [0], [1], [0, 0, 1, 1], [], []>} : vector<128x32xf32>, vector<32x128xf32>, vector<128x128xf32> -> vector<128x128xf32>
    %cst_3 = arith.constant 3.000000e+00 : f32
    %3 = vector.broadcast %cst_3 : f32 to vector<128x128xf32>
    %4 = arith.mulf %3, %2 : vector<128x128xf32>
    %5 = math.tanh %4 : vector<128x128xf32>
    %cst_4 = arith.constant 0.000000e+00 : f32
    %6 = vector.broadcast %cst_4 : f32 to vector<128x128xf32>
    %7 = arith.maximumf %5, %6 : vector<128x128xf32>
    %8 = tpu.iota {dimensions = array<i32: 1>} : vector<128x128xi32>
    %c16_i32 = arith.constant 16 : i32
    %9 = vector.broadcast %c16_i32 : i32 to vector<128x128xi32>
    %10 = arith.cmpi slt, %8, %9 : vector<128x128xi32>
    %cst_5 = arith.constant -1.000000e+00 : f32
    %11 = vector.broadcast %cst_5 : f32 to vector<128x128xf32>
    %12 = arith.select %10, %7, %11 : vector<128x128xi1>, vector<128x128xf32>
    %false = arith.constant false
    %13 = vector.broadcast %false : i1 to vector<128x128xi1>
    %cst_6 = arith.constant dense<0xFF800000> : vector<128xf32>
    %14 = vector.multi_reduction <maximumf>, %12, %cst_6 [1] : vector<128x128xf32> to vector<128xf32>
    %15 = vector.shape_cast %14 : vector<128xf32> to vector<128x1xf32>
    %16 = vector.broadcast %15 : vector<128x1xf32> to vector<128x128xf32>
    %17 = arith.cmpf oeq, %12, %16 : vector<128x128xf32>
    %c128_i32 = arith.constant 128 : i32
    %18 = vector.broadcast %c128_i32 : i32 to vector<128x128xi32>
    %19 = arith.select %17, %8, %18 : vector<128x128xi1>, vector<128x128xi32>
    %cst_7 = arith.constant dense<2147483647> : vector<128xi32>
    %20 = vector.multi_reduction <minsi>, %19, %cst_7 [1] : vector<128x128xi32> to vector<128xi32>
    %21 = vector.shape_cast %20 : vector<128xi32> to vector<128x1xi32>
    %22 = vector.broadcast %21 : vector<128x1xi32> to vector<128x128xi32>
    %23 = arith.cmpi eq, %8, %22 : vector<128x128xi32>
    %24 = arith.ori %13, %23 : vector<128x128xi1>
    %cst_8 = arith.constant -2.000000e+00 : f32
    %25 = vector.broadcast %cst_8 : f32 to vector<128x128xf32>
    %26 = arith.select %23, %25, %12 : vector<128x128xi1>, vector<128x128xf32>
    %cst_9 = arith.constant dense<0xFF800000> : vector<128xf32>
    %27 = vector.multi_reduction <maximumf>, %26, %cst_9 [1] : vector<128x128xf32> to vector<128xf32>
    %28 = vector.shape_cast %27 : vector<128xf32> to vector<128x1xf32>
    %29 = vector.broadcast %28 : vector<128x1xf32> to vector<128x128xf32>
    %30 = arith.cmpf oeq, %26, %29 : vector<128x128xf32>
    %c128_i32_10 = arith.constant 128 : i32
    %31 = vector.broadcast %c128_i32_10 : i32 to vector<128x128xi32>
    %32 = arith.select %30, %8, %31 : vector<128x128xi1>, vector<128x128xi32>
    %cst_11 = arith.constant dense<2147483647> : vector<128xi32>
    %33 = vector.multi_reduction <minsi>, %32, %cst_11 [1] : vector<128x128xi32> to vector<128xi32>
    %34 = vector.shape_cast %33 : vector<128xi32> to vector<128x1xi32>
    %35 = vector.broadcast %34 : vector<128x1xi32> to vector<128x128xi32>
    %36 = arith.cmpi eq, %8, %35 : vector<128x128xi32>
    %37 = arith.ori %24, %36 : vector<128x128xi1>
    %cst_12 = arith.constant -2.000000e+00 : f32
    %38 = vector.broadcast %cst_12 : f32 to vector<128x128xf32>
    %39 = arith.select %36, %38, %26 : vector<128x128xi1>, vector<128x128xf32>
    %cst_13 = arith.constant dense<0xFF800000> : vector<128xf32>
    %40 = vector.multi_reduction <maximumf>, %39, %cst_13 [1] : vector<128x128xf32> to vector<128xf32>
    %41 = vector.shape_cast %40 : vector<128xf32> to vector<128x1xf32>
    %42 = vector.broadcast %41 : vector<128x1xf32> to vector<128x128xf32>
    %43 = arith.cmpf oeq, %39, %42 : vector<128x128xf32>
    %c128_i32_14 = arith.constant 128 : i32
    %44 = vector.broadcast %c128_i32_14 : i32 to vector<128x128xi32>
    %45 = arith.select %43, %8, %44 : vector<128x128xi1>, vector<128x128xi32>
    %cst_15 = arith.constant dense<2147483647> : vector<128xi32>
    %46 = vector.multi_reduction <minsi>, %45, %cst_15 [1] : vector<128x128xi32> to vector<128xi32>
    %47 = vector.shape_cast %46 : vector<128xi32> to vector<128x1xi32>
    %48 = vector.broadcast %47 : vector<128x1xi32> to vector<128x128xi32>
    %49 = arith.cmpi eq, %8, %48 : vector<128x128xi32>
    %50 = arith.ori %37, %49 : vector<128x128xi1>
    %cst_16 = arith.constant -2.000000e+00 : f32
    %51 = vector.broadcast %cst_16 : f32 to vector<128x128xf32>
    %52 = arith.select %49, %51, %39 : vector<128x128xi1>, vector<128x128xf32>
    %cst_17 = arith.constant dense<0xFF800000> : vector<128xf32>
    %53 = vector.multi_reduction <maximumf>, %52, %cst_17 [1] : vector<128x128xf32> to vector<128xf32>
    %54 = vector.shape_cast %53 : vector<128xf32> to vector<128x1xf32>
    %55 = vector.broadcast %54 : vector<128x1xf32> to vector<128x128xf32>
    %56 = arith.cmpf oeq, %52, %55 : vector<128x128xf32>
    %c128_i32_18 = arith.constant 128 : i32
    %57 = vector.broadcast %c128_i32_18 : i32 to vector<128x128xi32>
    %58 = arith.select %56, %8, %57 : vector<128x128xi1>, vector<128x128xi32>
    %cst_19 = arith.constant dense<2147483647> : vector<128xi32>
    %59 = vector.multi_reduction <minsi>, %58, %cst_19 [1] : vector<128x128xi32> to vector<128xi32>
    %60 = vector.shape_cast %59 : vector<128xi32> to vector<128x1xi32>
    %61 = vector.broadcast %60 : vector<128x1xi32> to vector<128x128xi32>
    %62 = arith.cmpi eq, %8, %61 : vector<128x128xi32>
    %63 = arith.ori %50, %62 : vector<128x128xi1>
    %cst_20 = arith.constant 0.000000e+00 : f32
    %64 = vector.broadcast %cst_20 : f32 to vector<128x128xf32>
    %65 = arith.select %63, %7, %64 : vector<128x128xi1>, vector<128x128xf32>
    %c0_21 = arith.constant 0 : index
    %c0_22 = arith.constant 0 : index
    %66 = vector.load %arg3[%c0_21, %c0_22] : memref<128x128xf32, #tpu.memory_space<vmem>>, vector<128x128xf32>
    tpu.vector_store %arg3[%c0_21, %c0_22], %65 {strides = array<i32>} : memref<128x128xf32, #tpu.memory_space<vmem>>, vector<128x128xf32>,
    return
  }
  func.func @transform_0(%arg0: i32) -> (i32, i32) {
    %c0_i32 = arith.constant 0 : i32
    %c0_i32_0 = arith.constant 0 : i32
    return %arg0, %c0_i32 : i32, i32
  }
  func.func @transform_1(%arg0: i32) -> (i32, i32) {
    %c0_i32 = arith.constant 0 : i32
    %c0_i32_0 = arith.constant 0 : i32
    %c0_i32_1 = arith.constant 0 : i32
    return %c0_i32, %c0_i32_0 : i32, i32
  }
  func.func @transform_2(%arg0: i32) -> (i32, i32) {
    %c0_i32 = arith.constant 0 : i32
    %c0_i32_0 = arith.constant 0 : i32
    return %arg0, %c0_i32 : i32, i32
  }
}

</mosaic_0001>

<bundles_post_ra>
// kernel: tpu_custom_call.1
= control target key start
LH: loop header
LB: loop body
LE: loop exit
PB: predicated region body
PF: predicated region fallthrough
CT: control target
= control target key end

     0   :  { %vm32_vm0 = vcmask 261120   ;;  %s3614_s0 = inlined_call_operand.vmem [shape: f32[128,32], index: 0, kind: input, shape index: {}]   ;;  %s3615_s1 = inlined_call_operand.vmem [shape: f32[32,128], index: 1, kind: input, shape index: {}]   ;;  %s3616_s2 = inlined_call_operand.hbm [shape: f32[128,128], index: 2, kind: output, shape index: {}]  }
   0x1   :  { %v31_v0 = vld [vmem:[%s3615_s1 + $0x18] sm:$0xff]  ;;  %v30_v1 = vld [vmem:[%s3615_s1 + $0x10] sm:$0xff]  ;;  %v29_v2 = vld [vmem:[%s3615_s1 + $0x8] sm:$0xff] }
   0x2   :  { %1689 = vmatprep.subr.mxu0 %v31_v0  ;;  %1721 = vmatprep.subr.mxu1 %v31_v0  ;;  %v28_v3 = vld [vmem:[%s3615_s1] sm:$0xff] }
   0x3   :  { %1690 = vmatpush3.msra.mxu0 %v31_v0  ;;  %1725 = vmatpush3.msra.mxu1 %v31_v0  ;;  %v12_v4 = vld [vmem:[%s3614_s0] sm:$0xff] }
   0x4   :  { %1691 = vmatprep.subr.mxu0 %v30_v1  ;;  %1722 = vmatprep.subr.mxu1 %v30_v1  ;;  %v20_v5 = vld [vmem:[%s3614_s0 + $0x40] sm:$0xff] }
   0x5   :  { %1692 = vmatpush3.msra.mxu0 %v30_v1  ;;  %1726 = vmatpush3.msra.mxu1 %v30_v1 }
   0x6   :  { %1693 = vmatprep.subr.mxu0 %v29_v2  ;;  %1723 = vmatprep.subr.mxu1 %v29_v2 }
   0x7   :  { %1694 = vmatpush3.msra.mxu0 %v29_v2  ;;  %1727 = vmatpush3.msra.mxu1 %v29_v2 }
   0x8   :  { %7 = vsyncpa [#allocation3], 0  ;;  %1695 = vmatprep.subr.mxu0 %v28_v3  ;;  %1724 = vmatprep.subr.mxu1 %v28_v3  ;;  %v13_v6 = vld [vmem:[%s3614_s0 + $0x8] sm:$0xff]  ;;  %v14_v8 = vld [vmem:[%s3614_s0 + $0x10] sm:$0xff]  ;;  %v274_v38 = vlaneseq }
   0x9   :  { %v21_v7 = vld [vmem:[%s3614_s0 + $0x48] sm:$0xff]  ;;  %1696 = vmatpush3.msra.mxu0 %v28_v3  ;;  %1728 = vmatpush3.msra.mxu1 %v28_v3  ;;  %v22_v9 = vld [vmem:[%s3614_s0 + $0x50] sm:$0xff]  ;;  %v15_v10 = vld [vmem:[%s3614_s0 + $0x18] sm:$0xff] }
   0xa   :  { %1697 = vmatprep.mubr.msk.f32.mxu0 %vm32_vm0, %v12_v4  ;;  %1709 = vmatprep.mubr.msk.f32.mxu1 %vm32_vm0, %v20_v5  ;;  %v23_v11 = vld [vmem:[%s3614_s0 + $0x58] sm:$0xff]  ;;  %v16_v12 = vld [vmem:[%s3614_s0 + $0x20] sm:$0xff]  ;;  %v17_v14 = vld [vmem:[%s3614_s0 + $0x28] sm:$0xff]  ;;  %v1880_v43 = vand.u32 127, %v274_v38 }
   0xb   :  { %1698 = vmatmul.mubr.msk.f32.vlgmr.msra.gmra.mxu0 %vm32_vm0, %v13_v6  ;;  %1710 = vmatmul.mubr.msk.f32.vlgmr.msra.gmra.mxu1 %vm32_vm0, %v21_v7  ;;  %v24_v13 = vld [vmem:[%s3614_s0 + $0x60] sm:$0xff]  ;;  %v25_v15 = vld [vmem:[%s3614_s0 + $0x68] sm:$0xff]  ;;  %v18_v16 = vld [vmem:[%s3614_s0 + $0x30] sm:$0xff] }
   0xc   :  { %1700 = vmatprep.mubr.msk.f32.mxu0 %vm32_vm0, %v14_v8  ;;  %1712 = vmatprep.mubr.msk.f32.mxu1 %vm32_vm0, %v22_v9  ;;  %v26_v17 = vld [vmem:[%s3614_s0 + $0x70] sm:$0xff]  ;;  %v19_v18 = vld [vmem:[%s3614_s0 + $0x38] sm:$0xff]  ;;  %vm276_vm1 = vcmp.lt.s32.totalorder %v1880_v43, 16 }
   0xd   :  { %v27_v19 = vld [vmem:[%s3614_s0 + $0x78] sm:$0xff]  ;;  %s1786_s0 = smov [#allocation2]  }
   0xe   :  { %s1642_s20 = sshll.u32 %s1786_s0, 4  ;;  %s1643_s20 = int_to_ptr.vmem [resolvable:$true] %s1642_s20 }
   0xf   :  { %1701 = vmatmul.mubr.msk.f32.gmra.mxu0 %vm32_vm0, %v15_v10  ;;  %1713 = vmatmul.mubr.msk.f32.gmra.mxu1 %vm32_vm0, %v23_v11  ;;  %s1764_s21 = scalar_lea.vmem %s1643_s20, 2048  ;;  %p1769_p1 = scmp.lt.s32.totalorder %s1643_s20, %s1643_s20 }
  0x10   :  { %1703 = vmatprep.mubr.msk.f32.mxu0 %vm32_vm0, %v16_v12  ;;  %1715 = vmatprep.mubr.msk.f32.mxu1 %vm32_vm0, %v24_v13  ;;  %p1765_p0 = scmp.ne.s32.totalorder %s1643_s20, %s1764_s21  ;;  %p1770_p2 = scmp.lt.s32.totalorder %s1764_s21, %s1764_s21 }
  0x12   :  { %p1771_p3 = por %p1770_p2, %p1769_p1 }
  0x13   :  { %1704 = vmatmul.mubr.msk.f32.gmra.mxu0 %vm32_vm0, %v17_v14  ;;  %1716 = vmatmul.mubr.msk.f32.gmra.mxu1 %vm32_vm0, %v25_v15 }
  0x14   :  { %1706 = vmatprep.mubr.msk.f32.mxu0 %vm32_vm0, %v18_v16  ;;  %1718 = vmatprep.mubr.msk.f32.mxu1 %vm32_vm0, %v26_v17  ;;  %p1772_p4 = pnand %p1771_p3, %p1765_p0 }
  0x17   :  { %1707 = vmatmul.mubr.msk.f32.gmra.mxu0 %vm32_vm0, %v19_v18  ;;  %1719 = vmatmul.mubr.msk.f32.gmra.mxu1 %vm32_vm0, %v27_v19 }
  0xcb   :  { %v1699_v20 = vpop.f32.mrf.mxu0  ;;  %v1711_v21 = vpop.f32.mrf.mxu1 }
  0xcc   :  { %v227_v22 = vmul.f32 3.0, %v1699_v20  ;;  %v235_v23 = vmul.f32 3.0, %v1711_v21 }
  0xcd   :  { %v147_v24 = vpop.f32.mrf.mxu0  ;;  %v187_v25 = vpop.f32.mrf.mxu1 }
  0xce   :  { %1732 = vtanh.f32 %v227_v22  ;;  %v226_v26 = vmul.f32 3.0, %v147_v24  ;;  %v234_v27 = vmul.f32 3.0, %v187_v25 }
  0xcf   :  { %1734 = vtanh.f32 %v235_v23  ;;  %v1702_v28 = vpop.f32.mrf.mxu0  ;;  %v1714_v29 = vpop.f32.mrf.mxu1 }
  0xd0   :  { %1736 = vtanh.f32 %v226_v26  ;;  %v229_v30 = vmul.f32 3.0, %v1702_v28  ;;  %v237_v31 = vmul.f32 3.0, %v1714_v29 }
  0xd1   :  { %1738 = vtanh.f32 %v234_v27  ;;  %v157_v32 = vpop.f32.mrf.mxu0  ;;  %v197_v33 = vpop.f32.mrf.mxu1 }
  0xd2   :  { %1740 = vtanh.f32 %v229_v30  ;;  %v236_v34 = vmul.f32 3.0, %v197_v33  ;;  %v228_v35 = vmul.f32 3.0, %v157_v32 }
  0xd3   :  { %1742 = vtanh.f32 %v237_v31  ;;  %v1705_v36 = vpop.f32.mrf.mxu0  ;;  %v1717_v37 = vpop.f32.mrf.mxu1 }
  0xd4   :  { %v231_v39 = vmul.f32 3.0, %v1705_v36  ;;  %1744 = vtanh.f32 %v236_v34  ;;  %v239_v46 = vmul.f32 3.0, %v1717_v37 }
  0xd5   :  { %v167_v40 = vpop.f32.mrf.mxu0  ;;  %v207_v41 = vpop.f32.mrf.mxu1  ;;  %1746 = vtanh.f32 %v228_v35 }
  0xd6   :  { %v230_v42 = vmul.f32 3.0, %v167_v40  ;;  %v238_v45 = vmul.f32 3.0, %v207_v41 }
  0xd7   :  { %v1708_v44 = vpop.f32.mrf.mxu0  ;;  %v1720_v48 = vpop.f32.mrf.mxu1 }
  0xd8   :  { %1748 = vtanh.f32 %v230_v42  ;;  %v233_v55 = vmul.f32 3.0, %v1708_v44  ;;  %v241_v1 = vmul.f32 3.0, %v1720_v48 }
  0xd9   :  { %1750 = vtanh.f32 %v231_v39  ;;  %v177_v47 = vpop.f32.mrf.mxu0  ;;  %v217_v56 = vpop.f32.mrf.mxu1 }
  0xda   :  { %1752 = vtanh.f32 %v238_v45  ;;  %v232_v52 = vmul.f32 3.0, %v177_v47  ;;  %v240_v0 = vmul.f32 3.0, %v217_v56 }
  0xdb   :  { %v1882_v49 = vpop.eup %1732  ;;  %1754 = vtanh.f32 %v239_v46 }
  0xdc   :  { %3696 = vst [vmem:[#allocation5_spill] sm:$0xff] %v1882_v49  ;;  %v1885_v50 = vpop.eup %1734  ;;  %v3632_v51 = vmax.f32 %v1882_v49, 0.0  ;;  %1756 = vtanh.f32 %v232_v52 }
  0xdd   :  { %3697 = vst [vmem:[#allocation6_spill] sm:$0xff] %v1885_v50  ;;  %v1888_v53 = vpop.eup %1736  ;;  %v3631_v54 = vmax.f32 %v1885_v50, 0.0  ;;  %1758 = vtanh.f32 %v233_v55 }
  0xde   :  { %3698 = vst [vmem:[#allocation7_spill] sm:$0xff] %v1888_v53  ;;  %v1891_v57 = vpop.eup %1738  ;;  %v1897_v58 = vsel %vm276_vm1, %v3632_v51, -1.0  ;;  %v3630_v59 = vmax.f32 %v1888_v53, 0.0  ;;  %1760 = vtanh.f32 %v240_v0 }
  0xdf   :  { %3699 = vst [vmem:[#allocation8_spill] sm:$0xff] %v1891_v57  ;;  %v1900_v60 = vpop.eup %1740  ;;  %v1906_v61 = vsel %vm276_vm1, %v3631_v54, -1.0  ;;  %295 = vmax.xlane.f32.xlu0 %v1897_v58  ;;  %v3628_v5 = vmax.f32 %v1891_v57, 0.0  ;;  %1762 = vtanh.f32 %v241_v1 }
  0xe0   :  { %3700 = vst [vmem:[#allocation9_spill] sm:$0xff] %v1900_v60  ;;  %v1909_v62 = vpop.eup %1742  ;;  %311 = vmax.xlane.f32.xlu1 %v1906_v61  ;;  %v3629_v63 = vmax.f32 %v1900_v60, 0.0  ;;  %v1918_v3 = vsel %vm276_vm1, %v3630_v59, -1.0 }
  0xe1   :  { %3701 = vst [vmem:[#allocation10_spill] sm:$0xff] %v1909_v62  ;;  %v3627_v2 = vmax.f32 %v1909_v62, 0.0  ;;  %v1927_v6 = vpop.eup %1744  ;;  %v1947_v11 = vsel %vm276_vm1, %v3628_v5, -1.0 }
  0xe2   :  { %v1924_v4 = vsel %vm276_vm1, %v3629_v63, -1.0  ;;  %3702 = vst [vmem:[#allocation11_spill] sm:$0xff] %v1927_v6  ;;  %v1930_v7 = vpop.eup %1746  ;;  %v3624_v12 = vmax.f32 %v1927_v6, 0.0 }
  0xe3   :  { %293 = vmax.xlane.f32.xlu0 %v1918_v3  ;;  %3703 = vst [vmem:[#allocation12_spill] sm:$0xff] %v1930_v7  ;;  %v1939_v9 = vsel %vm276_vm1, %v3627_v2, -1.0  ;;  %v3626_v13 = vmax.f32 %v1930_v7, 0.0 }
  0xe4   :  { %299 = vmax.xlane.f32.xlu1 %v1924_v4  ;;  %v1963_v18 = vsel %vm276_vm1, %v3624_v12, -1.0 }
  0xe5   :  { %v1933_v8 = vpop.eup %1748  ;;  %v1970_v19 = vsel %vm276_vm1, %v3626_v13, -1.0 }
  0xe6   :  { %3704 = vst [vmem:[#allocation13_spill] sm:$0xff] %v1933_v8  ;;  %v1941_v10 = vpop.eup %1750  ;;  %v3622_v14 = vmax.f32 %v1933_v8, 0.0 }
  0xe7   :  { %3705 = vst [vmem:[#allocation14_spill] sm:$0xff] %v1941_v10  ;;  %309 = vmax.xlane.f32.xlu0 %v1947_v11  ;;  %v1954_v15 = vpop.eup %1752  ;;  %v3625_v16 = vmax.f32 %v1941_v10, 0.0 }
  0xe8   :  { %315 = vmax.xlane.f32.xlu1 %v1939_v9  ;;  %3706 = vst [vmem:[#allocation15_spill] sm:$0xff] %v1954_v15  ;;  %v1957_v17 = vpop.eup %1754  ;;  %v1977_v20 = vsel %vm276_vm1, %v3622_v14, -1.0  ;;  %v3620_v21 = vmax.f32 %v1954_v15, 0.0 }
  0xe9   :  { %3707 = vst [vmem:[#allocation16_spill] sm:$0xff] %v1957_v17  ;;  %v1980_v22 = vpop.eup %1756  ;;  %v1986_v23 = vsel %vm276_vm1, %v3625_v16, -1.0  ;;  %v3623_v24 = vmax.f32 %v1957_v17, 0.0 }
  0xea   :  { %3708 = vst [vmem:[#allocation17_spill] sm:$0xff] %v1980_v22  ;;  %v1989_v25 = vpop.eup %1758  ;;  %v1997_v26 = vsel %vm276_vm1, %v3620_v21, -1.0  ;;  %v3618_v27 = vmax.f32 %v1980_v22, 0.0 }
  0xeb   :  { %313 = vmax.xlane.f32.xlu0 %v1963_v18  ;;  %3709 = vst [vmem:[#allocation18_spill] sm:$0xff] %v1989_v25  ;;  %v2000_v28 = vpop.eup %1760  ;;  %v2006_v29 = vsel %vm276_vm1, %v3623_v24, -1.0  ;;  %v3621_v30 = vmax.f32 %v1989_v25, 0.0 }
  0xec   :  { %297 = vmax.xlane.f32.xlu1 %v1970_v19  ;;  %3710 = vst [vmem:[#allocation19_spill] sm:$0xff] %v2000_v28  ;;  %v2009_v31 = vpop.eup %1762  ;;  %v2017_v32 = vsel %vm276_vm1, %v3618_v27, -1.0  ;;  %v3617_v33 = vmax.f32 %v2000_v28, 0.0 }
  0xed   :  { %3711 = vst [vmem:[#allocation20_spill] sm:$0xff] %v2009_v31  ;;  %v2024_v34 = vsel %vm276_vm1, %v3621_v30, -1.0  ;;  %v3619_v35 = vmax.f32 %v2009_v31, 0.0 }
  0xee   :  { %v2033_v36 = vsel %vm276_vm1, %v3617_v33, -1.0 }
  0xef   :  { %301 = vmax.xlane.f32.xlu0 %v1977_v20  ;;  %v2039_v37 = vsel %vm276_vm1, %v3619_v35, -1.0 }
  0xf0   :  { %303 = vmax.xlane.f32.xlu1 %v1986_v23 }
  0xf3   :  { %317 = vmax.xlane.f32.xlu0 %v1997_v26 }
  0xf4   :  { %319 = vmax.xlane.f32.xlu1 %v2006_v29 }
  0xf7   :  { %305 = vmax.xlane.f32.xlu0 %v2017_v32 }
  0xf8   :  { %307 = vmax.xlane.f32.xlu1 %v2024_v34 }
  0xfb   :  { %321 = vmax.xlane.f32.xlu0 %v2033_v36 }
  0xfc   :  { %323 = vmax.xlane.f32.xlu1 %v2039_v37 }
 0x168   :  { %v296_v38 = vpop.xlane.xlu0 %295 }
 0x169   :  { %v312_v39 = vpop.xlane.xlu1 %311  ;;  %vm326_vm2 = vcmp.eq.f32.partialorder %v1897_v58, %v296_v38 }
 0x16a   :  { %vm334_vm3 = vcmp.eq.f32.partialorder %v1906_v61, %v312_v39  ;;  %v2046_v40 = vsel %vm326_vm2, %v1880_v43, 128 }
 0x16b   :  { %v2049_v41 = vsel %vm334_vm3, %v1880_v43, 128  ;;  %v372_v42 = vshra.s32 %v2046_v40, 16  ;;  %v371_v25 = vand.u32 65535, %v2046_v40 }
 0x16c   :  { %v294_v44 = vpop.xlane.xlu0 %293  ;;  %v484_v47 = vshra.s32 %v2049_v41, 16 }
 0x16d   :  { %vm325_vm4 = vcmp.eq.f32.partialorder %v1918_v3, %v294_v44  ;;  %v300_v45 = vpop.xlane.xlu1 %299  ;;  %v2053_v46 = vcvt.s32.f32 %v372_v42  ;;  %v373_v17 = vcvt.s32.f32 %v371_v25 }
 0x16e   :  { %v2057_v48 = vsel %vm325_vm4, %v1880_v43, 128  ;;  %vm328_vm5 = vcmp.eq.f32.partialorder %v1924_v4, %v300_v45  ;;  %v2066_v1 = vcvt.s32.f32 %v484_v47 }
 0x16f   :  { %v2061_v52 = vsel %vm328_vm5, %v1880_v43, 128  ;;  %375 = vmin.xlane.f32.xlu1 %v2053_v46  ;;  %v358_v55 = vshra.s32 %v2057_v48, 16 }
 0x170   :  { %v310_v56 = vpop.xlane.xlu0 %309  ;;  %v400_v39 = vshra.s32 %v2061_v52, 16  ;;  %v399_v40 = vand.u32 65535, %v2061_v52 }
 0x171   :  { %vm333_vm6 = vcmp.eq.f32.partialorder %v1947_v11, %v310_v56  ;;  %v316_v0 = vpop.xlane.xlu1 %315  ;;  %v2068_v38 = vcvt.s32.f32 %v358_v55 }
 0x172   :  { %v2072_v42 = vsel %vm333_vm6, %v1880_v43, 128  ;;  %vm336_vm7 = vcmp.eq.f32.partialorder %v1939_v9, %v316_v0  ;;  %v2082_v56 = vcvt.s32.f32 %v400_v39 }
 0x173   :  { %v2076_v44 = vsel %vm336_vm7, %v1880_v43, 128  ;;  %487 = vmin.xlane.f32.xlu1 %v2066_v1  ;;  %361 = vmin.xlane.f32.xlu0 %v2068_v38  ;;  %v470_v45 = vshra.s32 %v2072_v42, 16  ;;  %v469_v57 = vand.u32 65535, %v2072_v42 }
 0x174   :  { %v314_v47 = vpop.xlane.xlu0 %313  ;;  %v512_v27 = vshra.s32 %v2076_v44, 16  ;;  %v511_v52 = vand.u32 65535, %v2076_v44 }
 0x175   :  { %vm335_vm8 = vcmp.eq.f32.partialorder %v1963_v18, %v314_v47  ;;  %v298_v55 = vpop.xlane.xlu1 %297  ;;  %v2084_v33 = vcvt.s32.f32 %v470_v45 }
 0x176   :  { %vm327_vm9 = vcmp.eq.f32.partialorder %v1970_v19, %v298_v55  ;;  %v2089_v0 = vsel %vm335_vm8, %v1880_v43, 128  ;;  %v2098_v45 = vcvt.s32.f32 %v512_v27  ;;  %v513_v42 = vcvt.s32.f32 %v511_v52 }
 0x177   :  { %v2092_v35 = vsel %vm327_vm9, %v1880_v43, 128  ;;  %403 = vmin.xlane.f32.xlu1 %v2082_v56  ;;  %473 = vmin.xlane.f32.xlu0 %v2084_v33  ;;  %v498_v30 = vshra.s32 %v2089_v0, 16 }
 0x178   :  { %v302_v47 = vpop.xlane.xlu0 %301  ;;  %v386_v39 = vshra.s32 %v2092_v35, 16 }
 0x179   :  { %v304_v21 = vpop.xlane.xlu1 %303  ;;  %vm329_vm10 = vcmp.eq.f32.partialorder %v1977_v20, %v302_v47 }
 0x17a   :  { %vm330_vm11 = vcmp.eq.f32.partialorder %v1986_v23, %v304_v21  ;;  %v2101_v55 = vcvt.s32.f32 %v386_v39  ;;  %v2108_v24 = vsel %vm329_vm10, %v1880_v43, 128  ;;  %v2117_v39 = vcvt.s32.f32 %v498_v30 }
 0x17b   :  { %v2105_v14 = vsel %vm330_vm11, %v1880_v43, 128  ;;  %515 = vmin.xlane.f32.xlu1 %v2098_v45  ;;  %v414_v16 = vshra.s32 %v2108_v24, 16 }
 0x17c   :  { %389 = vmin.xlane.f32.xlu0 %v2101_v55  ;;  %v318_v12 = vpop.xlane.xlu0 %317  ;;  %v428_v27 = vshra.s32 %v2105_v14, 16  ;;  %v427_v44 = vand.u32 65535, %v2105_v14 }
 0x17d   :  { %v320_v47 = vpop.xlane.xlu1 %319  ;;  %vm337_vm12 = vcmp.eq.f32.partialorder %v1997_v26, %v318_v12 }
 0x17e   :  { %vm338_vm13 = vcmp.eq.f32.partialorder %v2006_v29, %v320_v47  ;;  %v2115_v21 = vcvt.s32.f32 %v428_v27  ;;  %v2124_v2 = vsel %vm337_vm12, %v1880_v43, 128  ;;  %v2133_v27 = vcvt.s32.f32 %v414_v16 }
 0x17f   :  { %v2121_v13 = vsel %vm338_vm13, %v1880_v43, 128  ;;  %v526_v63 = vshra.s32 %v2124_v2, 16 }
 0x180   :  { %431 = vmin.xlane.f32.xlu1 %v2115_v21  ;;  %501 = vmin.xlane.f32.xlu0 %v2117_v39  ;;  %v306_v5 = vpop.xlane.xlu0 %305  ;;  %v540_v12 = vshra.s32 %v2121_v13, 16 }
 0x181   :  { %v308_v47 = vpop.xlane.xlu1 %307  ;;  %vm331_vm14 = vcmp.eq.f32.partialorder %v2017_v32, %v306_v5 }
 0x182   :  { %vm332_vm15 = vcmp.eq.f32.partialorder %v2024_v34, %v308_v47  ;;  %v2131_v30 = vcvt.s32.f32 %v540_v12  ;;  %v2140_v54 = vsel %vm331_vm14, %v1880_v43, 128  ;;  %v2149_v12 = vcvt.s32.f32 %v526_v63 }
 0x183   :  { %v2137_v59 = vsel %vm332_vm15, %v1880_v43, 128  ;;  %v442_v28 = vshra.s32 %v2140_v54, 16 }
 0x184   :  { %543 = vmin.xlane.f32.xlu1 %v2131_v30  ;;  %417 = vmin.xlane.f32.xlu0 %v2133_v27  ;;  %v322_v51 = vpop.xlane.xlu0 %321  ;;  %v456_v5 = vshra.s32 %v2137_v59, 16 }
 0x185   :  { %v324_v47 = vpop.xlane.xlu1 %323  ;;  %vm339_vm0 = vcmp.eq.f32.partialorder %v2033_v36, %v322_v51 }
 0x186   :  { %vm340_vm1 = vcmp.eq.f32.partialorder %v2039_v37, %v324_v47  ;;  %v2147_v16 = vcvt.s32.f32 %v456_v5  ;;  %v2156_v31 = vsel %vm339_vm0, %v1880_v43, 128  ;;  %v2163_v5 = vcvt.s32.f32 %v442_v28 }
 0x187   :  { %v2153_v22 = vsel %vm340_vm1, %v1880_v43, 128  ;;  %v554_v63 = vshra.s32 %v2156_v31, 16  ;;  %v357_v28 = vand.u32 65535, %v2057_v48  ;;  %v471_v48 = vcvt.s32.f32 %v469_v57 }
 0x188   :  { %459 = vmin.xlane.f32.xlu1 %v2147_v16  ;;  %529 = vmin.xlane.f32.xlu0 %v2149_v12  ;;  %v568_v51 = vshra.s32 %v2153_v22, 16 }
 0x189   :  { %v2168_v47 = vcvt.s32.f32 %v554_v63  ;;  %v359_v62 = vcvt.s32.f32 %v357_v28 }
 0x18a   :  { %v2161_v15 = vcvt.s32.f32 %v568_v51  ;;  %v483_v51 = vand.u32 65535, %v2049_v41 }
 0x18c   :  { %571 = vmin.xlane.f32.xlu1 %v2161_v15  ;;  %445 = vmin.xlane.f32.xlu0 %v2163_v5  ;;  %v485_v7 = vcvt.s32.f32 %v483_v51 }
 0x190   :  { %557 = vmin.xlane.f32.xlu0 %v2168_v47 }
 0x1f8   :  { %v2172_v8 = vpop.xlane.xlu1 %375 }
 0x1f9   :  { %vm377_vm2 = vcmp.eq.f32.partialorder %v2053_v46, %v2172_v8  ;;  %v401_v46 = vcvt.s32.f32 %v399_v40 }
 0x1fa   :  { %v378_v6 = vsel %vm377_vm2, %v373_v17, inf }
 0x1fb   :  { %379 = vmin.xlane.f32.xlu1 %v378_v6 }
 0x1fc   :  { %v2178_v10 = vpop.xlane.xlu1 %487  ;;  %v2180_v63 = vpop.xlane.xlu0 %361 }
 0x1fd   :  { %vm489_vm3 = vcmp.eq.f32.partialorder %v2066_v1, %v2178_v10  ;;  %vm363_vm4 = vcmp.eq.f32.partialorder %v2068_v38, %v2180_v63  ;;  %v385_v1 = vand.u32 65535, %v2092_v35 }
 0x1fe   :  { %v490_v25 = vsel %vm489_vm3, %v485_v7, inf  ;;  %v364_v41 = vsel %vm363_vm4, %v359_v62, inf }
 0x1ff   :  { %491 = vmin.xlane.f32.xlu1 %v490_v25  ;;  %365 = vmin.xlane.f32.xlu0 %v364_v41  ;;  %v387_v57 = vcvt.s32.f32 %v385_v1  ;;  %v429_v25 = vcvt.s32.f32 %v427_v44 }
 0x200   :  { %v2188_v6 = vpop.xlane.xlu1 %403  ;;  %v2190_v17 = vpop.xlane.xlu0 %473 }
 0x201   :  { %vm405_vm5 = vcmp.eq.f32.partialorder %v2082_v56, %v2188_v6  ;;  %vm475_vm6 = vcmp.eq.f32.partialorder %v2084_v33, %v2190_v17  ;;  %v497_v56 = vand.u32 65535, %v2089_v0 }
 0x202   :  { %v406_v7 = vsel %vm405_vm5, %v401_v46, inf  ;;  %v476_v62 = vsel %vm475_vm6, %v471_v48, inf  ;;  %v413_v46 = vand.u32 65535, %v2108_v24  ;;  %v525_v24 = vand.u32 65535, %v2124_v2 }
 0x203   :  { %407 = vmin.xlane.f32.xlu1 %v406_v7  ;;  %477 = vmin.xlane.f32.xlu0 %v476_v62  ;;  %v499_v41 = vcvt.s32.f32 %v497_v56  ;;  %v441_v2 = vand.u32 65535, %v2140_v54 }
 0x204   :  { %v2198_v38 = vpop.xlane.xlu1 %515  ;;  %v415_v1 = vcvt.s32.f32 %v413_v46 }
 0x205   :  { %v2200_v51 = vpop.xlane.xlu0 %389  ;;  %vm517_vm7 = vcmp.eq.f32.partialorder %v2098_v45, %v2198_v38  ;;  %v539_v45 = vand.u32 65535, %v2121_v13  ;;  %v455_v13 = vand.u32 65535, %v2137_v59  ;;  %v567_v59 = vand.u32 65535, %v2153_v22 }
 0x206   :  { %v518_v33 = vsel %vm517_vm7, %v513_v42, inf  ;;  %vm391_vm8 = vcmp.eq.f32.partialorder %v2101_v55, %v2200_v51  ;;  %v553_v22 = vand.u32 65535, %v2156_v31  ;;  %v382_v31 = vcvt.f32.s32 %v2172_v8 }
 0x207   :  { %519 = vmin.xlane.f32.xlu1 %v518_v33  ;;  %v392_v35 = vsel %vm391_vm8, %v387_v57, inf  ;;  %v541_v52 = vcvt.s32.f32 %v539_v45  ;;  %v457_v42 = vcvt.s32.f32 %v455_v13  ;;  %v527_v57 = vcvt.s32.f32 %v525_v24 }
 0x208   :  { %393 = vmin.xlane.f32.xlu0 %v392_v35  ;;  %v569_v33 = vcvt.s32.f32 %v567_v59  ;;  %v443_v35 = vcvt.s32.f32 %v441_v2  ;;  %v494_v45 = vcvt.f32.s32 %v2178_v10  ;;  %v383_v46 = vshll.u32 %v382_v31, 16 }
 0x209   :  { %v2208_v28 = vpop.xlane.xlu1 %431  ;;  %v2210_v40 = vpop.xlane.xlu0 %501  ;;  %v480_v13 = vcvt.f32.s32 %v2190_v17 }
 0x20a   :  { %vm433_vm9 = vcmp.eq.f32.partialorder %v2115_v21, %v2208_v28  ;;  %vm503_vm10 = vcmp.eq.f32.partialorder %v2117_v39, %v2210_v40 }
 0x20b   :  { %v434_v14 = vsel %vm433_vm9, %v429_v25, inf  ;;  %v504_v0 = vsel %vm503_vm10, %v499_v41, inf  ;;  %v555_v25 = vcvt.s32.f32 %v553_v22  ;;  %v481_v17 = vshll.u32 %v480_v13, 16 }
 0x20c   :  { %435 = vmin.xlane.f32.xlu1 %v434_v14  ;;  %505 = vmin.xlane.f32.xlu0 %v504_v0 }
 0x20d   :  { %v2218_v55 = vpop.xlane.xlu1 %543  ;;  %v2220_v48 = vpop.xlane.xlu0 %417 }
 0x20e   :  { %vm545_vm11 = vcmp.eq.f32.partialorder %v2131_v30, %v2218_v55  ;;  %vm419_vm12 = vcmp.eq.f32.partialorder %v2133_v27, %v2220_v48 }
 0x20f   :  { %v546_v21 = vsel %vm545_vm11, %v541_v52, inf  ;;  %v420_v39 = vsel %vm419_vm12, %v415_v1, inf  ;;  %v495_v52 = vshll.u32 %v494_v45, 16  ;;  %v410_v1 = vcvt.f32.s32 %v2188_v6 }
 0x210   :  { %547 = vmin.xlane.f32.xlu1 %v546_v21  ;;  %421 = vmin.xlane.f32.xlu0 %v420_v39 }
 0x211   :  { %v2228_v7 = vpop.xlane.xlu1 %459  ;;  %v2230_v62 = vpop.xlane.xlu0 %529  ;;  %v411_v6 = vshll.u32 %v410_v1, 16 }
 0x212   :  { %vm461_vm13 = vcmp.eq.f32.partialorder %v2147_v16, %v2228_v7  ;;  %vm531_vm14 = vcmp.eq.f32.partialorder %v2149_v12, %v2230_v62 }
 0x213   :  { %v462_v30 = vsel %vm461_vm13, %v457_v42, inf  ;;  %v532_v27 = vsel %vm531_vm14, %v527_v57, inf  ;;  %v522_v57 = vcvt.f32.s32 %v2198_v38 }
 0x214   :  { %463 = vmin.xlane.f32.xlu1 %v462_v30  ;;  %533 = vmin.xlane.f32.xlu0 %v532_v27 }
 0x215   :  { %v2238_v44 = vpop.xlane.xlu1 %571  ;;  %v2240_v56 = vpop.xlane.xlu0 %445 }
 0x216   :  { %vm573_vm15 = vcmp.eq.f32.partialorder %v2161_v15, %v2238_v44  ;;  %vm447_vm0 = vcmp.eq.f32.partialorder %v2163_v5, %v2240_v56  ;;  %v368_v5 = vcvt.f32.s32 %v2180_v63 }
 0x217   :  { %v574_v54 = vsel %vm573_vm15, %v569_v33, inf  ;;  %v448_v16 = vsel %vm447_vm0, %v443_v35, inf }
 0x218   :  { %575 = vmin.xlane.f32.xlu1 %v574_v54  ;;  %449 = vmin.xlane.f32.xlu0 %v448_v16  ;;  %v369_v21 = vshll.u32 %v368_v5, 16  ;;  %v438_v54 = vcvt.f32.s32 %v2208_v28 }
 0x219   :  { %v2247_v12 = vpop.xlane.xlu0 %557 }
 0x21a   :  { %vm559_vm1 = vcmp.eq.f32.partialorder %v2168_v47, %v2247_v12 }
 0x21b   :  { %v560_v41 = vsel %vm559_vm1, %v555_v25, inf }
 0x21c   :  { %561 = vmin.xlane.f32.xlu0 %v560_v41 }
 0x284   :  { %v380_v15 = vpop.xlane.xlu1 %379 }
 0x285   :  { %v381_v14 = vcvt.f32.s32 %v380_v15  ;;  %v439_v15 = vshll.u32 %v438_v54, 16 }
 0x287   :  { %v2254_v0 = vadd.s32 %v383_v46, %v381_v14  ;;  %v550_v14 = vcvt.f32.s32 %v2218_v55 }
 0x288   :  { %v492_v24 = vpop.xlane.xlu1 %491  ;;  %v366_v47 = vpop.xlane.xlu0 %365 }
 0x289   :  { %v493_v39 = vcvt.f32.s32 %v492_v24  ;;  %v367_v42 = vcvt.f32.s32 %v366_v47  ;;  %vm582_vm2 = vcmp.eq.s32.totalorder %v1880_v43, %v2254_v0 }
 0x28a   :  { %v2264_v8 = vsel %vm582_vm2, -2.0, %v1897_v58  ;;  %v396_v58 = vcvt.f32.s32 %v2200_v51  ;;  %v523_v51 = vshll.u32 %v522_v57, 16 }
 0x28b   :  { %v2266_v10 = vadd.s32 %v495_v52, %v493_v39  ;;  %v2268_v63 = vadd.s32 %v369_v21, %v367_v42  ;;  %615 = vmax.xlane.f32.xlu1 %v2264_v8  ;;  %v551_v21 = vshll.u32 %v550_v14, 16  ;;  %v466_v39 = vcvt.f32.s32 %v2228_v7 }
 0x28c   :  { %v408_v59 = vpop.xlane.xlu1 %407  ;;  %v478_v2 = vpop.xlane.xlu0 %477  ;;  %v536_v42 = vcvt.f32.s32 %v2230_v62 }
 0x28d   :  { %v409_v30 = vcvt.f32.s32 %v408_v59  ;;  %v479_v27 = vcvt.f32.s32 %v478_v2  ;;  %vm590_vm3 = vcmp.eq.s32.totalorder %v1880_v43, %v2266_v10  ;;  %vm581_vm4 = vcmp.eq.s32.totalorder %v1880_v43, %v2268_v63 }
 0x28e   :  { %v2281_v33 = vsel %vm590_vm3, -2.0, %v1906_v61  ;;  %v2287_v38 = vsel %vm581_vm4, -2.0, %v1918_v3  ;;  %v508_v61 = vcvt.f32.s32 %v2210_v40  ;;  %v397_v3 = vshll.u32 %v396_v58, 16 }
 0x28f   :  { %v2289_v35 = vadd.s32 %v411_v6, %v409_v30  ;;  %v2291_v22 = vadd.s32 %v481_v17, %v479_v27  ;;  %631 = vmax.xlane.f32.xlu1 %v2281_v33  ;;  %613 = vmax.xlane.f32.xlu0 %v2287_v38  ;;  %v467_v30 = vshll.u32 %v466_v39, 16  ;;  %v537_v27 = vshll.u32 %v536_v42, 16 }
 0x290   :  { %v520_v16 = vpop.xlane.xlu1 %519  ;;  %v509_v5 = vshll.u32 %v508_v61, 16  ;;  %v578_v58 = vcvt.f32.s32 %v2238_v44 }
 0x291   :  { %3712 = vst [vmem:[#allocation21_spill] sm:$0xff] %v2291_v22  ;;  %v521_v25 = vcvt.f32.s32 %v520_v16  ;;  %v394_v41 = vpop.xlane.xlu0 %393  ;;  %vm584_vm5 = vcmp.eq.s32.totalorder %v1880_v43, %v2289_v35  ;;  %vm589_vm6 = vcmp.eq.s32.totalorder %v1880_v43, %v2291_v22 }
 0x292   :  { %v395_v31 = vcvt.f32.s32 %v394_v41  ;;  %v2305_v45 = vsel %vm584_vm5, -2.0, %v1924_v4  ;;  %v2311_v28 = vsel %vm589_vm6, -2.0, %v1947_v11  ;;  %v424_v4 = vcvt.f32.s32 %v2220_v48 }
 0x293   :  { %v2313_v40 = vadd.s32 %v523_v51, %v521_v25  ;;  %619 = vmax.xlane.f32.xlu1 %v2305_v45  ;;  %629 = vmax.xlane.f32.xlu0 %v2311_v28  ;;  %v579_v41 = vshll.u32 %v578_v58, 16 }
 0x294   :  { %v2317_v46 = vadd.s32 %v397_v3, %v395_v31  ;;  %v564_v31 = vcvt.f32.s32 %v2247_v12 }
 0x295   :  { %3713 = vst [vmem:[#allocation22_spill] sm:$0xff] %v2313_v40  ;;  %v436_v52 = vpop.xlane.xlu1 %435  ;;  %v506_v1 = vpop.xlane.xlu0 %505  ;;  %vm592_vm7 = vcmp.eq.s32.totalorder %v1880_v43, %v2313_v40 }
 0x296   :  { %3714 = vst [vmem:[#allocation23_spill] sm:$0xff] %v2317_v46  ;;  %v437_v11 = vcvt.f32.s32 %v436_v52  ;;  %v507_v13 = vcvt.f32.s32 %v506_v1  ;;  %v2327_v24 = vsel %vm592_vm7, -2.0, %v1939_v9  ;;  %vm3675_vm8 = vcmp.eq.s32.totalorder %v1880_v43, %v2317_v46 }
 0x297   :  { %635 = vmax.xlane.f32.xlu1 %v2327_v24  ;;  %v2336_v55 = vsel %vm3675_vm8, -2.0, %v1970_v19  ;;  %v425_v9 = vshll.u32 %v424_v4, 16 }
 0x298   :  { %v2338_v48 = vadd.s32 %v439_v15, %v437_v11  ;;  %v2340_v47 = vadd.s32 %v509_v5, %v507_v13  ;;  %617 = vmax.xlane.f32.xlu0 %v2336_v55  ;;  %v565_v11 = vshll.u32 %v564_v31, 16 }
 0x299   :  { %v548_v6 = vpop.xlane.xlu1 %547  ;;  %v422_v17 = vpop.xlane.xlu0 %421 }
 0x29a   :  { %3715 = vst [vmem:[#allocation24_spill] sm:$0xff] %v2338_v48  ;;  %3716 = vst [vmem:[#allocation25_spill] sm:$0xff] %v2340_v47  ;;  %v549_v57 = vcvt.f32.s32 %v548_v6  ;;  %v423_v59 = vcvt.f32.s32 %v422_v17  ;;  %vm3669_vm9 = vcmp.eq.s32.totalorder %v1880_v43, %v2338_v48  ;;  %vm3668_vm10 = vcmp.eq.s32.totalorder %v1880_v43, %v2340_v47 }
 0x29b   :  { %v2353_v19 = vsel %vm3669_vm9, -2.0, %v1986_v23  ;;  %v2359_v7 = vsel %vm3668_vm10, -2.0, %v1963_v18  ;;  %v452_v23 = vcvt.f32.s32 %v2240_v56 }
 0x29c   :  { %v2361_v62 = vadd.s32 %v551_v21, %v549_v57  ;;  %v2363_v2 = vadd.s32 %v425_v9, %v423_v59  ;;  %623 = vmax.xlane.f32.xlu1 %v2353_v19  ;;  %633 = vmax.xlane.f32.xlu0 %v2359_v7 }
 0x29d   :  { %v464_v51 = vpop.xlane.xlu1 %463  ;;  %v534_v54 = vpop.xlane.xlu0 %533  ;;  %v453_v3 = vshll.u32 %v452_v23, 16 }
 0x29e   :  { %3717 = vst [vmem:[#allocation26_spill] sm:$0xff] %v2361_v62  ;;  %3718 = vst [vmem:[#allocation27_spill] sm:$0xff] %v2363_v2  ;;  %v465_v16 = vcvt.f32.s32 %v464_v51  ;;  %v535_v61 = vcvt.f32.s32 %v534_v54  ;;  %vm3667_vm11 = vcmp.eq.s32.totalorder %v1880_v43, %v2361_v62  ;;  %vm3666_vm12 = vcmp.eq.s32.totalorder %v1880_v43, %v2363_v2 }
 0x29f   :  { %v2377_v18 = vsel %vm3667_vm11, -2.0, %v2006_v29  ;;  %v2383_v44 = vsel %vm3666_vm12, -2.0, %v1977_v20 }
 0x2a0   :  { %v2385_v56 = vadd.s32 %v467_v30, %v465_v16  ;;  %v2387_v25 = vadd.s32 %v537_v27, %v535_v61  ;;  %639 = vmax.xlane.f32.xlu1 %v2377_v18  ;;  %621 = vmax.xlane.f32.xlu0 %v2383_v44 }
 0x2a1   :  { %v576_v29 = vpop.xlane.xlu1 %575  ;;  %v450_v15 = vpop.xlane.xlu0 %449 }
 0x2a2   :  { %3719 = vst [vmem:[#allocation28_spill] sm:$0xff] %v2385_v56  ;;  %3720 = vst [vmem:[#allocation29_spill] sm:$0xff] %v2387_v25  ;;  %v577_v5 = vcvt.f32.s32 %v576_v29  ;;  %v451_v14 = vcvt.f32.s32 %v450_v15  ;;  %vm3665_vm13 = vcmp.eq.s32.totalorder %v1880_v43, %v2385_v56  ;;  %vm3647_vm14 = vcmp.eq.s32.totalorder %v1880_v43, %v2387_v25 }
 0x2a3   :  { %v2400_v20 = vsel %vm3665_vm13, -2.0, %v2024_v34  ;;  %v2406_v12 = vsel %vm3647_vm14, -2.0, %v1997_v26 }
 0x2a4   :  { %v2408_v4 = vadd.s32 %v579_v41, %v577_v5  ;;  %v2410_v52 = vadd.s32 %v453_v3, %v451_v14  ;;  %627 = vmax.xlane.f32.xlu1 %v2400_v20  ;;  %637 = vmax.xlane.f32.xlu0 %v2406_v12 }
 0x2a5   :  { %v562_v1 = vpop.xlane.xlu0 %561 }
 0x2a6   :  { %3721 = vst [vmem:[#allocation30_spill] sm:$0xff] %v2408_v4  ;;  %3722 = vst [vmem:[#allocation31_spill] sm:$0xff] %v2410_v52  ;;  %v563_v13 = vcvt.f32.s32 %v562_v1  ;;  %vm3646_vm15 = vcmp.eq.s32.totalorder %v1880_v43, %v2408_v4  ;;  %vm3645_vm0 = vcmp.eq.s32.totalorder %v1880_v43, %v2410_v52 }
 0x2a7   :  { %v2422_v26 = vsel %vm3646_vm15, -2.0, %v2039_v37  ;;  %v2428_v34 = vsel %vm3645_vm0, -2.0, %v2017_v32 }
 0x2a8   :  { %v2430_v21 = vadd.s32 %v565_v11, %v563_v13  ;;  %643 = vmax.xlane.f32.xlu1 %v2422_v26  ;;  %625 = vmax.xlane.f32.xlu0 %v2428_v34 }
 0x2aa   :  { %3723 = vst [vmem:[#allocation32_spill] sm:$0xff] %v2430_v21  ;;  %vm3648_vm1 = vcmp.eq.s32.totalorder %v1880_v43, %v2430_v21 }
 0x2ab   :  { %v2440_v37 = vsel %vm3648_vm1, -2.0, %v2033_v36 }
 0x2ac   :  { %641 = vmax.xlane.f32.xlu0 %v2440_v37 }
 0x314   :  { %v616_v9 = vpop.xlane.xlu1 %615 }
 0x315   :  { %vm646_vm0 = vcmp.eq.f32.partialorder %v2264_v8, %v616_v9 }
 0x316   :  { %v2445_v32 = vsel %vm646_vm0, %v1880_v43, 128 }
 0x317   :  { %v692_v39 = vshra.s32 %v2445_v32, 16  ;;  %v691_v2 = vand.u32 65535, %v2445_v32 }
 0x318   :  { %v632_v42 = vpop.xlane.xlu1 %631  ;;  %v614_v6 = vpop.xlane.xlu0 %613 }
 0x319   :  { %vm654_vm15 = vcmp.eq.f32.partialorder %v2281_v33, %v632_v42  ;;  %vm645_vm14 = vcmp.eq.f32.partialorder %v2287_v38, %v614_v6  ;;  %v2450_v17 = vcvt.s32.f32 %v692_v39 }
 0x31a   :  { %v2453_v36 = vsel %vm654_vm15, %v1880_v43, 128  ;;  %v2456_v57 = vsel %vm645_vm14, %v1880_v43, 128 }
 0x31b   :  { %695 = vmin.xlane.f32.xlu1 %v2450_v17  ;;  %v804_v59 = vshra.s32 %v2453_v36, 16  ;;  %v678_v30 = vshra.s32 %v2456_v57, 16  ;;  %v677_v62 = vand.u32 65535, %v2456_v57 }
 0x31c   :  { %v620_v27 = vpop.xlane.xlu1 %619  ;;  %v630_v58 = vpop.xlane.xlu0 %629 }
 0x31d   :  { %vm648_vm0 = vcmp.eq.f32.partialorder %v2305_v45, %v620_v27  ;;  %vm653_vm1 = vcmp.eq.f32.partialorder %v2311_v28, %v630_v58  ;;  %v2463_v23 = vcvt.s32.f32 %v804_v59  ;;  %v2465_v51 = vcvt.s32.f32 %v678_v30 }
 0x31e   :  { %v2468_v54 = vsel %vm648_vm0, %v1880_v43, 128  ;;  %v2471_v16 = vsel %vm653_vm1, %v1880_v43, 128  ;;  %v679_v40 = vcvt.s32.f32 %v677_v62 }
 0x31f   :  { %807 = vmin.xlane.f32.xlu1 %v2463_v23  ;;  %681 = vmin.xlane.f32.xlu0 %v2465_v51  ;;  %v720_v61 = vshra.s32 %v2468_v54, 16  ;;  %v790_v41 = vshra.s32 %v2471_v16, 16  ;;  %v719_v32 = vand.u32 65535, %v2468_v54  ;;  %v789_v22 = vand.u32 65535, %v2471_v16 }
 0x320   :  { %v636_v3 = vpop.xlane.xlu1 %635 }
 0x321   :  { %vm656_vm14 = vcmp.eq.f32.partialorder %v2327_v24, %v636_v3  ;;  %v618_v31 = vpop.xlane.xlu0 %617  ;;  %v2478_v29 = vcvt.s32.f32 %v720_v61  ;;  %v2480_v15 = vcvt.s32.f32 %v790_v41  ;;  %v721_v57 = vcvt.s32.f32 %v719_v32 }
 0x322   :  { %v2483_v5 = vsel %vm656_vm14, %v1880_v43, 128  ;;  %vm647_vm15 = vcmp.eq.f32.partialorder %v2336_v55, %v618_v31  ;;  %v791_v62 = vcvt.s32.f32 %v789_v22 }
 0x323   :  { %v2487_v14 = vsel %vm647_vm15, %v1880_v43, 128  ;;  %723 = vmin.xlane.f32.xlu1 %v2478_v29  ;;  %793 = vmin.xlane.f32.xlu0 %v2480_v15  ;;  %v832_v1 = vshra.s32 %v2483_v5, 16  ;;  %v831_v54 = vand.u32 65535, %v2483_v5 }
 0x324   :  { %v706_v11 = vshra.s32 %v2487_v14, 16 }
 0x325   :  { %v624_v13 = vpop.xlane.xlu1 %623  ;;  %v634_v9 = vpop.xlane.xlu0 %633  ;;  %v2493_v39 = vcvt.s32.f32 %v832_v1  ;;  %v833_v16 = vcvt.s32.f32 %v831_v54 }
 0x326   :  { %vm650_vm1 = vcmp.eq.f32.partialorder %v2353_v19, %v624_v13  ;;  %vm655_vm0 = vcmp.eq.f32.partialorder %v2359_v7, %v634_v9  ;;  %v2497_v42 = vcvt.s32.f32 %v706_v11 }
 0x327   :  { %v2500_v6 = vsel %vm650_vm1, %v1880_v43, 128  ;;  %v2503_v59 = vsel %vm655_vm0, %v1880_v43, 128  ;;  %835 = vmin.xlane.f32.xlu1 %v2493_v39 }
 0x328   :  { %709 = vmin.xlane.f32.xlu0 %v2497_v42  ;;  %v748_v30 = vshra.s32 %v2500_v6, 16  ;;  %v818_v27 = vshra.s32 %v2503_v59, 16  ;;  %v817_v5 = vand.u32 65535, %v2503_v59 }
 0x329   :  { %v640_v58 = vpop.xlane.xlu1 %639  ;;  %v622_v61 = vpop.xlane.xlu0 %621 }
 0x32a   :  { %vm658_vm14 = vcmp.eq.f32.partialorder %v2377_v18, %v640_v58  ;;  %vm649_vm15 = vcmp.eq.f32.partialorder %v2383_v44, %v622_v61  ;;  %v2511_v41 = vcvt.s32.f32 %v748_v30  ;;  %v2513_v3 = vcvt.s32.f32 %v818_v27 }
 0x32b   :  { %v2516_v31 = vsel %vm658_vm14, %v1880_v43, 128  ;;  %v2519_v1 = vsel %vm649_vm15, %v1880_v43, 128 }
 0x32c   :  { %751 = vmin.xlane.f32.xlu1 %v2511_v41  ;;  %821 = vmin.xlane.f32.xlu0 %v2513_v3  ;;  %v860_v11 = vshra.s32 %v2516_v31, 16  ;;  %v734_v13 = vshra.s32 %v2519_v1, 16 }
 0x32d   :  { %v628_v9 = vpop.xlane.xlu1 %627  ;;  %v638_v58 = vpop.xlane.xlu0 %637 }
 0x32e   :  { %vm652_vm1 = vcmp.eq.f32.partialorder %v2400_v20, %v628_v9  ;;  %vm657_vm0 = vcmp.eq.f32.partialorder %v2406_v12, %v638_v58  ;;  %v2527_v30 = vcvt.s32.f32 %v860_v11  ;;  %v2529_v27 = vcvt.s32.f32 %v734_v13 }
 0x32f   :  { %v2532_v61 = vsel %vm652_vm1, %v1880_v43, 128  ;;  %v2535_v60 = vsel %vm657_vm0, %v1880_v43, 128 }
 0x330   :  { %863 = vmin.xlane.f32.xlu1 %v2527_v30  ;;  %737 = vmin.xlane.f32.xlu0 %v2529_v27  ;;  %v776_v53 = vshra.s32 %v2532_v61, 16  ;;  %v846_v9 = vshra.s32 %v2535_v60, 16 }
 0x331   :  { %v644_v50 = vpop.xlane.xlu1 %643  ;;  %v626_v58 = vpop.xlane.xlu0 %625 }
 0x332   :  { %vm660_vm14 = vcmp.eq.f32.partialorder %v2422_v26, %v644_v50  ;;  %vm651_vm15 = vcmp.eq.f32.partialorder %v2428_v34, %v626_v58  ;;  %v2543_v11 = vcvt.s32.f32 %v776_v53  ;;  %v2545_v13 = vcvt.s32.f32 %v846_v9 }
 0x333   :  { %v2548_v49 = vsel %vm660_vm14, %v1880_v43, 128  ;;  %v2551_v21 = vsel %vm651_vm15, %v1880_v43, 128 }
 0x334   :  { %779 = vmin.xlane.f32.xlu1 %v2543_v11  ;;  %849 = vmin.xlane.f32.xlu0 %v2545_v13  ;;  %v888_v52 = vshra.s32 %v2548_v49, 16  ;;  %v762_v50 = vshra.s32 %v2551_v21, 16 }
 0x335   :  { %v642_v4 = vpop.xlane.xlu0 %641 }
 0x336   :  { %vm659_vm1 = vcmp.eq.f32.partialorder %v2440_v37, %v642_v4  ;;  %v2558_v53 = vcvt.s32.f32 %v888_v52  ;;  %v2560_v9 = vcvt.s32.f32 %v762_v50  ;;  %v693_v52 = vcvt.s32.f32 %v691_v2 }
 0x337   :  { %v2563_v58 = vsel %vm659_vm1, %v1880_v43, 128  ;;  %v803_v50 = vand.u32 65535, %v2453_v36 }
 0x338   :  { %891 = vmin.xlane.f32.xlu1 %v2558_v53  ;;  %765 = vmin.xlane.f32.xlu0 %v2560_v9  ;;  %v874_v25 = vshra.s32 %v2563_v58, 16 }
 0x339   :  { %v805_v46 = vcvt.s32.f32 %v803_v50 }
 0x33a   :  { %v2568_v56 = vcvt.s32.f32 %v874_v25 }
 0x33c   :  { %877 = vmin.xlane.f32.xlu0 %v2568_v56 }
 0x3a4   :  { %v2572_v4 = vpop.xlane.xlu1 %695 }
 0x3a5   :  { %vm697_vm0 = vcmp.eq.f32.partialorder %v2450_v17, %v2572_v4 }
 0x3a6   :  { %v698_v47 = vsel %vm697_vm0, %v693_v52, inf }
 0x3a7   :  { %699 = vmin.xlane.f32.xlu1 %v698_v47 }
 0x3a8   :  { %v2578_v48 = vpop.xlane.xlu1 %807  ;;  %v2580_v25 = vpop.xlane.xlu0 %681 }
 0x3a9   :  { %vm809_vm14 = vcmp.eq.f32.partialorder %v2463_v23, %v2578_v48  ;;  %vm683_vm15 = vcmp.eq.f32.partialorder %v2465_v51, %v2580_v25  ;;  %v705_v23 = vand.u32 65535, %v2487_v14 }
 0x3aa   :  { %v810_v2 = vsel %vm809_vm14, %v805_v46, inf  ;;  %v684_v17 = vsel %vm683_vm15, %v679_v40, inf }
 0x3ab   :  { %811 = vmin.xlane.f32.xlu1 %v810_v2  ;;  %685 = vmin.xlane.f32.xlu0 %v684_v17  ;;  %v707_v22 = vcvt.s32.f32 %v705_v23  ;;  %v819_v17 = vcvt.s32.f32 %v817_v5 }
 0x3ac   :  { %v2588_v47 = vpop.xlane.xlu1 %723  ;;  %v2590_v36 = vpop.xlane.xlu0 %793 }
 0x3ad   :  { %vm725_vm1 = vcmp.eq.f32.partialorder %v2478_v29, %v2588_v47  ;;  %vm795_vm0 = vcmp.eq.f32.partialorder %v2480_v15, %v2590_v36  ;;  %v747_v29 = vand.u32 65535, %v2500_v6 }
 0x3ae   :  { %v726_v46 = vsel %vm725_vm1, %v721_v57, inf  ;;  %v796_v40 = vsel %vm795_vm0, %v791_v62, inf  ;;  %v733_v57 = vand.u32 65535, %v2519_v1  ;;  %v845_v1 = vand.u32 65535, %v2535_v60 }
 0x3af   :  { %727 = vmin.xlane.f32.xlu1 %v726_v46  ;;  %797 = vmin.xlane.f32.xlu0 %v796_v40  ;;  %v749_v2 = vcvt.s32.f32 %v747_v29  ;;  %v761_v60 = vand.u32 65535, %v2551_v21 }
 0x3b0   :  { %v2598_v51 = vpop.xlane.xlu1 %835  ;;  %v735_v23 = vcvt.s32.f32 %v733_v57 }
 0x3b1   :  { %v2600_v52 = vpop.xlane.xlu0 %709  ;;  %vm837_vm14 = vcmp.eq.f32.partialorder %v2493_v39, %v2598_v51  ;;  %v859_v39 = vand.u32 65535, %v2516_v31  ;;  %v775_v31 = vand.u32 65535, %v2532_v61  ;;  %v887_v61 = vand.u32 65535, %v2548_v49 }
 0x3b2   :  { %v838_v15 = vsel %vm837_vm14, %v833_v16, inf  ;;  %vm711_vm15 = vcmp.eq.f32.partialorder %v2497_v42, %v2600_v52  ;;  %v873_v49 = vand.u32 65535, %v2563_v58  ;;  %v702_v58 = vcvt.f32.s32 %v2572_v4 }
 0x3b3   :  { %839 = vmin.xlane.f32.xlu1 %v838_v15  ;;  %v712_v14 = vsel %vm711_vm15, %v707_v22, inf  ;;  %v861_v54 = vcvt.s32.f32 %v859_v39  ;;  %v777_v16 = vcvt.s32.f32 %v775_v31  ;;  %v847_v22 = vcvt.s32.f32 %v845_v1 }
 0x3b4   :  { %713 = vmin.xlane.f32.xlu0 %v712_v14  ;;  %v889_v15 = vcvt.s32.f32 %v887_v61  ;;  %v763_v14 = vcvt.s32.f32 %v761_v60  ;;  %v814_v39 = vcvt.f32.s32 %v2578_v48  ;;  %v703_v57 = vshll.u32 %v702_v58, 16 }
 0x3b5   :  { %v2608_v50 = vpop.xlane.xlu1 %751  ;;  %v2610_v32 = vpop.xlane.xlu0 %821  ;;  %v800_v31 = vcvt.f32.s32 %v2590_v36 }
 0x3b6   :  { %vm753_vm1 = vcmp.eq.f32.partialorder %v2511_v41, %v2608_v50  ;;  %vm823_vm0 = vcmp.eq.f32.partialorder %v2513_v3, %v2610_v32 }
 0x3b7   :  { %v754_v42 = vsel %vm753_vm1, %v749_v2, inf  ;;  %v824_v6 = vsel %vm823_vm0, %v819_v17, inf  ;;  %v875_v2 = vcvt.s32.f32 %v873_v49  ;;  %v801_v36 = vshll.u32 %v800_v31, 16 }
 0x3b8   :  { %755 = vmin.xlane.f32.xlu1 %v754_v42  ;;  %825 = vmin.xlane.f32.xlu0 %v824_v6 }
 0x3b9   :  { %v2618_v59 = vpop.xlane.xlu1 %863  ;;  %v2620_v62 = vpop.xlane.xlu0 %737 }
 0x3ba   :  { %vm865_vm14 = vcmp.eq.f32.partialorder %v2527_v30, %v2618_v59  ;;  %vm739_vm15 = vcmp.eq.f32.partialorder %v2529_v27, %v2620_v62 }
 0x3bb   :  { %v866_v41 = vsel %vm865_vm14, %v861_v54, inf  ;;  %v740_v3 = vsel %vm739_vm15, %v735_v23, inf  ;;  %v815_v54 = vshll.u32 %v814_v39, 16  ;;  %v730_v23 = vcvt.f32.s32 %v2588_v47 }
 0x3bc   :  { %867 = vmin.xlane.f32.xlu1 %v866_v41  ;;  %741 = vmin.xlane.f32.xlu0 %v740_v3 }
 0x3bd   :  { %v2628_v46 = vpop.xlane.xlu1 %779  ;;  %v2630_v40 = vpop.xlane.xlu0 %849  ;;  %v731_v47 = vshll.u32 %v730_v23, 16 }
 0x3be   :  { %vm781_vm1 = vcmp.eq.f32.partialorder %v2543_v11, %v2628_v46  ;;  %vm851_vm0 = vcmp.eq.f32.partialorder %v2545_v13, %v2630_v40 }
 0x3bf   :  { %v782_v30 = vsel %vm781_vm1, %v777_v16, inf  ;;  %v852_v27 = vsel %vm851_vm0, %v847_v22, inf  ;;  %v842_v22 = vcvt.f32.s32 %v2598_v51 }
 0x3c0   :  { %783 = vmin.xlane.f32.xlu1 %v782_v30  ;;  %853 = vmin.xlane.f32.xlu0 %v852_v27 }
 0x3c1   :  { %v2638_v29 = vpop.xlane.xlu1 %891  ;;  %v2640_v5 = vpop.xlane.xlu0 %765 }
 0x3c2   :  { %vm893_vm14 = vcmp.eq.f32.partialorder %v2558_v53, %v2638_v29  ;;  %vm767_vm15 = vcmp.eq.f32.partialorder %v2560_v9, %v2640_v5  ;;  %v688_v9 = vcvt.f32.s32 %v2580_v25 }
 0x3c3   :  { %v894_v21 = vsel %vm893_vm14, %v889_v15, inf  ;;  %v768_v11 = vsel %vm767_vm15, %v763_v14, inf }
 0x3c4   :  { %895 = vmin.xlane.f32.xlu1 %v894_v21  ;;  %769 = vmin.xlane.f32.xlu0 %v768_v11  ;;  %v689_v41 = vshll.u32 %v688_v9, 16  ;;  %v758_v21 = vcvt.f32.s32 %v2608_v50 }
 0x3c5   :  { %v2647_v13 = vpop.xlane.xlu0 %877 }
 0x3c6   :  { %vm879_vm1 = vcmp.eq.f32.partialorder %v2568_v56, %v2647_v13 }
 0x3c7   :  { %v880_v17 = vsel %vm879_vm1, %v875_v2, inf }
 0x3c8   :  { %881 = vmin.xlane.f32.xlu0 %v880_v17 }
 0x430   :  { %v700_v53 = vpop.xlane.xlu1 %699 }
 0x431   :  { %v701_v42 = vcvt.f32.s32 %v700_v53  ;;  %v759_v53 = vshll.u32 %v758_v21, 16 }
 0x433   :  { %v2654_v6 = vadd.s32 %v703_v57, %v701_v42  ;;  %v870_v42 = vcvt.f32.s32 %v2618_v59 }
 0x434   :  { %v812_v1 = vpop.xlane.xlu1 %811  ;;  %v686_v56 = vpop.xlane.xlu0 %685 }
 0x435   :  { %v813_v3 = vcvt.f32.s32 %v812_v1  ;;  %v687_v16 = vcvt.f32.s32 %v686_v56  ;;  %vm902_vm0 = vcmp.eq.s32.totalorder %v1880_v43, %v2654_v6 }
 0x436   :  { %v2664_v48 = vsel %vm902_vm0, -2.0, %v2264_v8  ;;  %v716_v8 = vcvt.f32.s32 %v2600_v52  ;;  %v843_v52 = vshll.u32 %v842_v22, 16 }
 0x437   :  { %v2666_v4 = vadd.s32 %v815_v54, %v813_v3  ;;  %v2668_v25 = vadd.s32 %v689_v41, %v687_v16  ;;  %951 = vmax.xlane.f32.xlu1 %v2664_v48  ;;  %v871_v41 = vshll.u32 %v870_v42, 16  ;;  %v786_v3 = vcvt.f32.s32 %v2628_v46 }
 0x438   :  { %v728_v61 = vpop.xlane.xlu1 %727  ;;  %v798_v60 = vpop.xlane.xlu0 %797  ;;  %v856_v16 = vcvt.f32.s32 %v2630_v40 }
 0x439   :  { %v729_v30 = vcvt.f32.s32 %v728_v61  ;;  %v799_v27 = vcvt.f32.s32 %v798_v60  ;;  %vm910_vm14 = vcmp.eq.s32.totalorder %v1880_v43, %v2666_v4  ;;  %vm901_vm15 = vcmp.eq.s32.totalorder %v1880_v43, %v2668_v25 }
 0x43a   :  { %v2681_v15 = vsel %vm910_vm14, -2.0, %v2281_v33  ;;  %v2687_v51 = vsel %vm901_vm15, -2.0, %v2287_v38  ;;  %v828_v33 = vcvt.f32.s32 %v2610_v32  ;;  %v717_v38 = vshll.u32 %v716_v8, 16 }
 0x43b   :  { %v2689_v14 = vadd.s32 %v731_v47, %v729_v30  ;;  %v2691_v49 = vadd.s32 %v801_v36, %v799_v27  ;;  %967 = vmax.xlane.f32.xlu1 %v2681_v15  ;;  %949 = vmax.xlane.f32.xlu0 %v2687_v51  ;;  %v787_v30 = vshll.u32 %v786_v3, 16  ;;  %v857_v27 = vshll.u32 %v856_v16, 16 }
 0x43c   :  { %v840_v11 = vpop.xlane.xlu1 %839  ;;  %v829_v9 = vshll.u32 %v828_v33, 16  ;;  %v898_v8 = vcvt.f32.s32 %v2638_v29 }
 0x43d   :  { %v841_v2 = vcvt.f32.s32 %v840_v11  ;;  %v714_v17 = vpop.xlane.xlu0 %713  ;;  %vm904_vm1 = vcmp.eq.s32.totalorder %v1880_v43, %v2689_v14  ;;  %vm909_vm13 = vcmp.eq.s32.totalorder %v1880_v43, %v2691_v49 }
 0x43e   :  { %v715_v58 = vcvt.f32.s32 %v714_v17  ;;  %v2705_v39 = vsel %vm904_vm1, -2.0, %v2305_v45  ;;  %v2711_v50 = vsel %vm909_vm13, -2.0, %v2311_v28  ;;  %v744_v45 = vcvt.f32.s32 %v2620_v62 }
 0x43f   :  { %v2713_v32 = vadd.s32 %v843_v52, %v841_v2  ;;  %955 = vmax.xlane.f32.xlu1 %v2705_v39  ;;  %965 = vmax.xlane.f32.xlu0 %v2711_v50  ;;  %v899_v17 = vshll.u32 %v898_v8, 16 }
 0x440   :  { %v2717_v57 = vadd.s32 %v717_v38, %v715_v58  ;;  %v884_v58 = vcvt.f32.s32 %v2647_v13 }
 0x441   :  { %v756_v54 = vpop.xlane.xlu1 %755  ;;  %v826_v23 = vpop.xlane.xlu0 %825  ;;  %vm912_vm12 = vcmp.eq.s32.totalorder %v1880_v43, %v2713_v32 }
 0x442   :  { %v757_v28 = vcvt.f32.s32 %v756_v54  ;;  %v827_v31 = vcvt.f32.s32 %v826_v23  ;;  %v2727_v1 = vsel %vm912_vm12, -2.0, %v2327_v24  ;;  %vm3679_vm11 = vcmp.eq.s32.totalorder %v1880_v43, %v2717_v57 }
 0x443   :  { %971 = vmax.xlane.f32.xlu1 %v2727_v1  ;;  %v2736_v59 = vsel %vm3679_vm11, -2.0, %v2336_v55  ;;  %v745_v24 = vshll.u32 %v744_v45, 16 }
 0x444   :  { %v2738_v62 = vadd.s32 %v759_v53, %v757_v28  ;;  %v2740_v56 = vadd.s32 %v829_v9, %v827_v31  ;;  %953 = vmax.xlane.f32.xlu0 %v2736_v59  ;;  %v885_v28 = vshll.u32 %v884_v58, 16 }
 0x445   :  { %v868_v47 = vpop.xlane.xlu1 %867  ;;  %v742_v36 = vpop.xlane.xlu0 %741 }
 0x446   :  { %v869_v22 = vcvt.f32.s32 %v868_v47  ;;  %v743_v61 = vcvt.f32.s32 %v742_v36  ;;  %vm3671_vm10 = vcmp.eq.s32.totalorder %v1880_v43, %v2738_v62  ;;  %vm3670_vm9 = vcmp.eq.s32.totalorder %v1880_v43, %v2740_v56 }
 0x447   :  { %v2753_v55 = vsel %vm3671_vm10, -2.0, %v2353_v19  ;;  %v2759_v46 = vsel %vm3670_vm9, -2.0, %v2359_v7  ;;  %v772_v19 = vcvt.f32.s32 %v2640_v5 }
 0x448   :  { %3724 = vst [vmem:[#allocation33_spill] sm:$0xff] %v2759_v46  ;;  %v2761_v40 = vadd.s32 %v871_v41, %v869_v22  ;;  %v2763_v60 = vadd.s32 %v745_v24, %v743_v61  ;;  %959 = vmax.xlane.f32.xlu1 %v2753_v55  ;;  %969 = vmax.xlane.f32.xlu0 %v2759_v46 }
 0x449   :  { %v784_v52 = vpop.xlane.xlu1 %783  ;;  %v854_v21 = vpop.xlane.xlu0 %853  ;;  %v773_v38 = vshll.u32 %v772_v19, 16 }
 0x44a   :  { %3725 = vst [vmem:[#allocation34_spill] sm:$0xff] %v2761_v40  ;;  %3726 = vst [vmem:[#allocation35_spill] sm:$0xff] %v2763_v60  ;;  %v785_v11 = vcvt.f32.s32 %v784_v52  ;;  %v855_v33 = vcvt.f32.s32 %v854_v21  ;;  %vm3673_vm9 = vcmp.eq.s32.totalorder %v1880_v43, %v2761_v40  ;;  %vm3672_vm10 = vcmp.eq.s32.totalorder %v1880_v43, %v2763_v60 }
 0x44b   :  { %v2777_v7 = vsel %vm3673_vm9, -2.0, %v2377_v18  ;;  %v2783_v29 = vsel %vm3672_vm10, -2.0, %v2383_v44 }
 0x44c   :  { %3727 = vst [vmem:[#allocation36_spill] sm:$0xff] %v2777_v7  ;;  %3728 = vst [vmem:[#allocation37_spill] sm:$0xff] %v2783_v29  ;;  %v2785_v5 = vadd.s32 %v787_v30, %v785_v11  ;;  %v2787_v2 = vadd.s32 %v857_v27, %v855_v33  ;;  %975 = vmax.xlane.f32.xlu1 %v2777_v7  ;;  %957 = vmax.xlane.f32.xlu0 %v2783_v29 }
 0x44d   :  { %v896_v18 = vpop.xlane.xlu1 %895  ;;  %v770_v53 = vpop.xlane.xlu0 %769 }
 0x44e   :  { %3729 = vst [vmem:[#allocation38_spill] sm:$0xff] %v2785_v5  ;;  %3730 = vst [vmem:[#allocation39_spill] sm:$0xff] %v2787_v2  ;;  %v897_v9 = vcvt.f32.s32 %v896_v18  ;;  %v771_v42 = vcvt.f32.s32 %v770_v53  ;;  %vm3674_vm10 = vcmp.eq.s32.totalorder %v1880_v43, %v2785_v5  ;;  %vm3676_vm9 = vcmp.eq.s32.totalorder %v1880_v43, %v2787_v2 }
 0x44f   :  { %v2800_v44 = vsel %vm3674_vm10, -2.0, %v2400_v20  ;;  %v2806_v13 = vsel %vm3676_vm9, -2.0, %v2406_v12 }
 0x450   :  { %3731 = vst [vmem:[#allocation40_spill] sm:$0xff] %v2800_v44  ;;  %3732 = vst [vmem:[#allocation41_spill] sm:$0xff] %v2806_v13  ;;  %v2808_v45 = vadd.s32 %v899_v17, %v897_v9  ;;  %v2810_v54 = vadd.s32 %v773_v38, %v771_v42  ;;  %963 = vmax.xlane.f32.xlu1 %v2800_v44  ;;  %973 = vmax.xlane.f32.xlu0 %v2806_v13 }
 0x451   :  { %v882_v23 = vpop.xlane.xlu0 %881 }
 0x452   :  { %3733 = vst [vmem:[#allocation42_spill] sm:$0xff] %v2808_v45  ;;  %3734 = vst [vmem:[#allocation43_spill] sm:$0xff] %v2810_v54  ;;  %v883_v31 = vcvt.f32.s32 %v882_v23  ;;  %vm3678_vm10 = vcmp.eq.s32.totalorder %v1880_v43, %v2808_v45  ;;  %vm3677_vm8 = vcmp.eq.s32.totalorder %v1880_v43, %v2810_v54 }
 0x453   :  { %v2822_v20 = vsel %vm3678_vm10, -2.0, %v2422_v26  ;;  %v2828_v12 = vsel %vm3677_vm8, -2.0, %v2428_v34 }
 0x454   :  { %3735 = vst [vmem:[#allocation44_spill] sm:$0xff] %v2822_v20  ;;  %3736 = vst [vmem:[#allocation45_spill] sm:$0xff] %v2828_v12  ;;  %v2830_v41 = vadd.s32 %v885_v28, %v883_v31  ;;  %979 = vmax.xlane.f32.xlu1 %v2822_v20  ;;  %961 = vmax.xlane.f32.xlu0 %v2828_v12 }
 0x456   :  { %3737 = vst [vmem:[#allocation46_spill] sm:$0xff] %v2830_v41  ;;  %vm3680_vm9 = vcmp.eq.s32.totalorder %v1880_v43, %v2830_v41 }
 0x457   :  { %v2840_v26 = vsel %vm3680_vm9, -2.0, %v2440_v37 }
 0x458   :  { %3738 = vst [vmem:[#allocation47_spill] sm:$0xff] %v2840_v26  ;;  %977 = vmax.xlane.f32.xlu0 %v2840_v26 }
 0x4c0   :  { %v952_v24 = vpop.xlane.xlu1 %951 }
 0x4c1   :  { %vm982_vm8 = vcmp.eq.f32.partialorder %v2664_v48, %v952_v24 }
 0x4c2   :  { %v2845_v34 = vsel %vm982_vm8, %v1880_v43, 128 }
 0x4c3   :  { %v1028_v3 = vshra.s32 %v2845_v34, 16 }
 0x4c4   :  { %v968_v16 = vpop.xlane.xlu1 %967  ;;  %v950_v47 = vpop.xlane.xlu0 %949 }
 0x4c5   :  { %v2848_v36 = vcvt.s32.f32 %v1028_v3  ;;  %vm990_vm10 = vcmp.eq.f32.partialorder %v2681_v15, %v968_v16  ;;  %vm981_vm11 = vcmp.eq.f32.partialorder %v2687_v51, %v950_v47 }
 0x4c6   :  { %v2853_v37 = vsel %vm990_vm10, %v1880_v43, 128  ;;  %v2856_v22 = vsel %vm981_vm11, %v1880_v43, 128 }
 0x4c7   :  { %v1140_v61 = vshra.s32 %v2853_v37, 16  ;;  %v1014_v30 = vshra.s32 %v2856_v22, 16  ;;  %1031 = vmin.xlane.f32.xlu1 %v2848_v36 }
 0x4c8   :  { %v956_v27 = vpop.xlane.xlu1 %955  ;;  %v966_v8 = vpop.xlane.xlu0 %965 }
 0x4c9   :  { %v2861_v19 = vcvt.s32.f32 %v1140_v61  ;;  %v2863_v52 = vcvt.s32.f32 %v1014_v30  ;;  %vm984_vm8 = vcmp.eq.f32.partialorder %v2705_v39, %v956_v27  ;;  %vm989_vm10 = vcmp.eq.f32.partialorder %v2711_v50, %v966_v8 }
 0x4ca   :  { %v2868_v21 = vsel %vm984_vm8, %v1880_v43, 128  ;;  %v2871_v11 = vsel %vm989_vm10, %v1880_v43, 128 }
 0x4cb   :  { %1143 = vmin.xlane.f32.xlu1 %v2861_v19  ;;  %1017 = vmin.xlane.f32.xlu0 %v2863_v52  ;;  %v1056_v33 = vshra.s32 %v2868_v21, 16  ;;  %v1126_v17 = vshra.s32 %v2871_v11, 16 }
 0x4cc   :  { %v972_v38 = vpop.xlane.xlu1 %971 }
 0x4cd   :  { %vm992_vm11 = vcmp.eq.f32.partialorder %v2727_v1, %v972_v38  ;;  %v954_v58 = vpop.xlane.xlu0 %953  ;;  %v2878_v18 = vcvt.s32.f32 %v1056_v33  ;;  %v2880_v53 = vcvt.s32.f32 %v1126_v17 }
 0x4ce   :  { %v2883_v9 = vsel %vm992_vm11, %v1880_v43, 128  ;;  %vm983_vm8 = vcmp.eq.f32.partialorder %v2736_v59, %v954_v58 }
 0x4cf   :  { %v1168_v42 = vshra.s32 %v2883_v9, 16  ;;  %v2888_v23 = vsel %vm983_vm8, %v1880_v43, 128  ;;  %1059 = vmin.xlane.f32.xlu1 %v2878_v18  ;;  %1129 = vmin.xlane.f32.xlu0 %v2880_v53 }
 0x4d0   :  { %v1042_v28 = vshra.s32 %v2888_v23, 16 }
 0x4d1   :  { %v960_v31 = vpop.xlane.xlu1 %959  ;;  %v970_v24 = vpop.xlane.xlu0 %969  ;;  %v2893_v3 = vcvt.s32.f32 %v1168_v42 }
 0x4d2   :  { %vm986_vm10 = vcmp.eq.f32.partialorder %v2753_v55, %v960_v31  ;;  %vm991_vm11 = vcmp.eq.f32.partialorder %v2759_v46, %v970_v24  ;;  %v2897_v16 = vcvt.s32.f32 %v1042_v28 }
 0x4d3   :  { %v2900_v47 = vsel %vm986_vm10, %v1880_v43, 128  ;;  %v2903_v61 = vsel %vm991_vm11, %v1880_v43, 128  ;;  %1171 = vmin.xlane.f32.xlu1 %v2893_v3 }
 0x4d4   :  { %v1084_v30 = vshra.s32 %v2900_v47, 16  ;;  %v1154_v27 = vshra.s32 %v2903_v61, 16  ;;  %1045 = vmin.xlane.f32.xlu0 %v2897_v16 }
 0x4d5   :  { %v976_v8 = vpop.xlane.xlu1 %975  ;;  %v958_v33 = vpop.xlane.xlu0 %957 }
 0x4d6   :  { %v2909_v17 = vcvt.s32.f32 %v1084_v30  ;;  %v2911_v38 = vcvt.s32.f32 %v1154_v27  ;;  %vm994_vm8 = vcmp.eq.f32.partialorder %v2777_v7, %v976_v8  ;;  %vm985_vm10 = vcmp.eq.f32.partialorder %v2783_v29, %v958_v33 }
 0x4d7   :  { %v2916_v58 = vsel %vm994_vm8, %v1880_v43, 128  ;;  %v2919_v42 = vsel %vm985_vm10, %v1880_v43, 128  ;;  %v1027_v29 = vand.u32 65535, %v2845_v34  ;;  %v1055_v34 = vand.u32 65535, %v2868_v21 }
 0x4d8   :  { %1087 = vmin.xlane.f32.xlu1 %v2909_v17  ;;  %v1196_v28 = vshra.s32 %v2916_v58, 16  ;;  %v1070_v31 = vshra.s32 %v2919_v42, 16  ;;  %1157 = vmin.xlane.f32.xlu0 %v2911_v38  ;;  %v1041_v21 = vand.u32 65535, %v2888_v23 }
 0x4d9   :  { %v964_v24 = vpop.xlane.xlu1 %963  ;;  %v974_v30 = vpop.xlane.xlu0 %973 }
 0x4da   :  { %vm988_vm11 = vcmp.eq.f32.partialorder %v2800_v44, %v964_v24  ;;  %vm993_vm9 = vcmp.eq.f32.partialorder %v2806_v13, %v974_v30  ;;  %v2927_v27 = vcvt.s32.f32 %v1196_v28  ;;  %v2929_v8 = vcvt.s32.f32 %v1070_v31 }
 0x4db   :  { %v2932_v33 = vsel %vm988_vm11, %v1880_v43, 128  ;;  %v2935_v41 = vsel %vm993_vm9, %v1880_v43, 128 }
 0x4dc   :  { %v1112_v54 = vshra.s32 %v2932_v33, 16  ;;  %v1182_v45 = vshra.s32 %v2935_v41, 16  ;;  %1199 = vmin.xlane.f32.xlu1 %v2927_v27  ;;  %1073 = vmin.xlane.f32.xlu0 %v2929_v8 }
 0x4dd   :  { %v980_v24 = vpop.xlane.xlu1 %979  ;;  %v962_v30 = vpop.xlane.xlu0 %961 }
 0x4de   :  { %vm996_vm8 = vcmp.eq.f32.partialorder %v2822_v20, %v980_v24  ;;  %vm987_vm10 = vcmp.eq.f32.partialorder %v2828_v12, %v962_v30  ;;  %v2943_v28 = vcvt.s32.f32 %v1112_v54  ;;  %v2945_v31 = vcvt.s32.f32 %v1182_v45 }
 0x4df   :  { %v2948_v13 = vsel %vm996_vm8, %v1880_v43, 128  ;;  %v2951_v44 = vsel %vm987_vm10, %v1880_v43, 128 }
 0x4e0   :  { %v1224_v2 = vshra.s32 %v2948_v13, 16  ;;  %v1098_v5 = vshra.s32 %v2951_v44, 16  ;;  %1115 = vmin.xlane.f32.xlu1 %v2943_v28  ;;  %1185 = vmin.xlane.f32.xlu0 %v2945_v31 }
 0x4e1   :  { %v978_v24 = vpop.xlane.xlu0 %977 }
 0x4e2   :  { %vm995_vm9 = vcmp.eq.f32.partialorder %v2840_v26, %v978_v24  ;;  %v2958_v54 = vcvt.s32.f32 %v1224_v2  ;;  %v2960_v45 = vcvt.s32.f32 %v1098_v5  ;;  %v1029_v24 = vcvt.s32.f32 %v1027_v29 }
 0x4e3   :  { %v2963_v30 = vsel %vm995_vm9, %v1880_v43, 128  ;;  %v1139_v2 = vand.u32 65535, %v2853_v37  ;;  %v1013_v5 = vand.u32 65535, %v2856_v22  ;;  %v1125_v29 = vand.u32 65535, %v2871_v11 }
 0x4e4   :  { %v1210_v12 = vshra.s32 %v2963_v30, 16  ;;  %1227 = vmin.xlane.f32.xlu1 %v2958_v54  ;;  %1101 = vmin.xlane.f32.xlu0 %v2960_v45 }
 0x4e5   :  { %v1141_v60 = vcvt.s32.f32 %v1139_v2  ;;  %v1015_v40 = vcvt.s32.f32 %v1013_v5  ;;  %v1127_v22 = vcvt.s32.f32 %v1125_v29 }
 0x4e6   :  { %v2968_v20 = vcvt.s32.f32 %v1210_v12 }
 0x4e8   :  { %1213 = vmin.xlane.f32.xlu0 %v2968_v20 }
 0x550   :  { %v2974_v26 = vpop.xlane.xlu1 %1031 }
 0x551   :  { %vm1033_vm11 = vcmp.eq.f32.partialorder %v2848_v36, %v2974_v26 }
 0x552   :  { %v1034_v7 = vsel %vm1033_vm11, %v1029_v24, inf  ;;  %v1167_v24 = vand.u32 65535, %v2883_v9  ;;  %v1043_v9 = vcvt.s32.f32 %v1041_v21  ;;  %v1111_v21 = vand.u32 65535, %v2932_v33 }
 0x553   :  { %1035 = vmin.xlane.f32.xlu1 %v1034_v7  ;;  %v1057_v7 = vcvt.s32.f32 %v1055_v34  ;;  %v1153_v34 = vand.u32 65535, %v2903_v61  ;;  %v1069_v61 = vand.u32 65535, %v2919_v42  ;;  %v1223_v33 = vand.u32 65535, %v2948_v13 }
 0x554   :  { %v2978_v12 = vpop.xlane.xlu1 %1143  ;;  %v2980_v46 = vpop.xlane.xlu0 %1017  ;;  %v1209_v13 = vand.u32 65535, %v2963_v30 }
 0x555   :  { %vm1145_vm8 = vcmp.eq.f32.partialorder %v2861_v19, %v2978_v12  ;;  %vm1019_vm10 = vcmp.eq.f32.partialorder %v2863_v52, %v2980_v46  ;;  %v1169_v19 = vcvt.s32.f32 %v1167_v24  ;;  %v1083_v52 = vand.u32 65535, %v2900_v47 }
 0x556   :  { %v1146_v37 = vsel %vm1145_vm8, %v1141_v60, inf  ;;  %v1020_v36 = vsel %vm1019_vm10, %v1015_v40, inf  ;;  %v1155_v47 = vcvt.s32.f32 %v1153_v34  ;;  %v1071_v24 = vcvt.s32.f32 %v1069_v61 }
 0x557   :  { %1147 = vmin.xlane.f32.xlu1 %v1146_v37  ;;  %1021 = vmin.xlane.f32.xlu0 %v1020_v36  ;;  %v1085_v29 = vcvt.s32.f32 %v1083_v52  ;;  %v1195_v36 = vand.u32 65535, %v2916_v58  ;;  %v1181_v58 = vand.u32 65535, %v2935_v41  ;;  %v1097_v41 = vand.u32 65535, %v2951_v44 }
 0x558   :  { %v2989_v2 = vpop.xlane.xlu1 %1059  ;;  %v2991_v5 = vpop.xlane.xlu0 %1129  ;;  %v1225_v34 = vcvt.s32.f32 %v1223_v33  ;;  %v1150_v61 = vcvt.f32.s32 %v2978_v12 }
 0x559   :  { %vm1061_vm9 = vcmp.eq.f32.partialorder %v2878_v18, %v2989_v2  ;;  %vm1131_vm11 = vcmp.eq.f32.partialorder %v2880_v53, %v2991_v5 }
 0x55a   :  { %v1062_v60 = vsel %vm1061_vm9, %v1057_v7, inf  ;;  %v1132_v40 = vsel %vm1131_vm11, %v1127_v22, inf  ;;  %v1197_v22 = vcvt.s32.f32 %v1195_v36  ;;  %v1038_v36 = vcvt.f32.s32 %v2974_v26 }
 0x55b   :  { %1063 = vmin.xlane.f32.xlu1 %v1062_v60  ;;  %1133 = vmin.xlane.f32.xlu0 %v1132_v40  ;;  %v1113_v40 = vcvt.s32.f32 %v1111_v21  ;;  %v1066_v21 = vcvt.f32.s32 %v2989_v2 }
 0x55c   :  { %v2999_v11 = vpop.xlane.xlu1 %1171 }
 0x55d   :  { %vm1173_vm8 = vcmp.eq.f32.partialorder %v2893_v3, %v2999_v11  ;;  %v3004_v23 = vpop.xlane.xlu0 %1045  ;;  %v1067_v0 = vshll.u32 %v1066_v21, 16 }
 0x55e   :  { %vm1047_vm10 = vcmp.eq.f32.partialorder %v2897_v16, %v3004_v23  ;;  %v1174_v18 = vsel %vm1173_vm8, %v1169_v19, inf  ;;  %v1183_v19 = vcvt.s32.f32 %v1181_v58  ;;  %v1136_v58 = vcvt.f32.s32 %v2991_v5 }
 0x55f   :  { %1175 = vmin.xlane.f32.xlu1 %v1174_v18  ;;  %v1048_v53 = vsel %vm1047_vm10, %v1043_v9, inf  ;;  %v1099_v18 = vcvt.s32.f32 %v1097_v41 }
 0x560   :  { %1049 = vmin.xlane.f32.xlu0 %v1048_v53  ;;  %v1137_v6 = vshll.u32 %v1136_v58, 16 }
 0x561   :  { %v3008_v37 = vpop.xlane.xlu1 %1087  ;;  %v3014_v3 = vpop.xlane.xlu0 %1157 }
 0x562   :  { %vm1089_vm9 = vcmp.eq.f32.partialorder %v2909_v17, %v3008_v37  ;;  %vm1159_vm11 = vcmp.eq.f32.partialorder %v2911_v38, %v3014_v3  ;;  %v1164_v35 = vcvt.f32.s32 %v3014_v3 }
 0x563   :  { %v1090_v16 = vsel %vm1089_vm9, %v1085_v29, inf  ;;  %v1160_v7 = vsel %vm1159_vm11, %v1155_v47, inf  ;;  %v1211_v29 = vcvt.s32.f32 %v1209_v13  ;;  %v1094_v13 = vcvt.f32.s32 %v3008_v37 }
 0x564   :  { %1091 = vmin.xlane.f32.xlu1 %v1090_v16  ;;  %1161 = vmin.xlane.f32.xlu0 %v1160_v7  ;;  %v1039_v16 = vshll.u32 %v1038_v36, 16 }
 0x565   :  { %v3020_v60 = vpop.xlane.xlu1 %1199  ;;  %v3022_v42 = vpop.xlane.xlu0 %1073 }
 0x566   :  { %vm1201_vm8 = vcmp.eq.f32.partialorder %v2927_v27, %v3020_v60  ;;  %vm1075_vm10 = vcmp.eq.f32.partialorder %v2929_v8, %v3022_v42  ;;  %v1206_v3 = vcvt.f32.s32 %v3020_v60 }
 0x567   :  { %v1202_v17 = vsel %vm1201_vm8, %v1197_v22, inf  ;;  %v1076_v38 = vsel %vm1075_vm10, %v1071_v24, inf  ;;  %v1151_v24 = vshll.u32 %v1150_v61, 16 }
 0x568   :  { %1203 = vmin.xlane.f32.xlu1 %v1202_v17  ;;  %1077 = vmin.xlane.f32.xlu0 %v1076_v38 }
 0x569   :  { %v3030_v52 = vpop.xlane.xlu1 %1115  ;;  %v3032_v9 = vpop.xlane.xlu0 %1185 }
 0x56a   :  { %vm1117_vm9 = vcmp.eq.f32.partialorder %v2943_v28, %v3030_v52  ;;  %vm1187_vm11 = vcmp.eq.f32.partialorder %v2945_v31, %v3032_v9 }
 0x56b   :  { %v1118_v27 = vsel %vm1117_vm9, %v1113_v40, inf  ;;  %v1188_v8 = vsel %vm1187_vm11, %v1183_v19, inf  ;;  %vm918_vm11 = vmor %vm582_vm2, %vm902_vm0  ;;  %v1052_v19 = vcvt.f32.s32 %v3004_v23 }
 0x56c   :  { %1119 = vmin.xlane.f32.xlu1 %v1118_v27  ;;  %1189 = vmin.xlane.f32.xlu0 %v1188_v8  ;;  %vm926_vm2 = vmor %vm590_vm3, %vm910_vm14 }
 0x56d   :  { %v3039_v53 = vpop.xlane.xlu1 %1227  ;;  %v3041_v44 = vpop.xlane.xlu0 %1101  ;;  %vm917_vm0 = vmor %vm581_vm4, %vm901_vm15 }
 0x56e   :  { %vm1229_vm8 = vcmp.eq.f32.partialorder %v2958_v54, %v3039_v53  ;;  %vm1103_vm10 = vcmp.eq.f32.partialorder %v2960_v45, %v3041_v44  ;;  %v1024_v45 = vcvt.f32.s32 %v2980_v46  ;;  %vm920_vm14 = vmor %vm584_vm5, %vm904_vm1  ;;  %vm3751_vm1 = vcmp.eq.s32.totalorder %v1880_v43, %v2717_v57 }
 0x56f   :  { %v1230_v28 = vsel %vm1229_vm8, %v1225_v34, inf  ;;  %v1104_v31 = vsel %vm1103_vm10, %v1099_v18, inf  ;;  %vm925_vm15 = vmor %vm589_vm6, %vm909_vm13  ;;  %v3775_v18 = vld [vmem:[#allocation27_spill] sm:$0xff] }
 0x570   :  { %1231 = vmin.xlane.f32.xlu1 %v1230_v28  ;;  %1105 = vmin.xlane.f32.xlu0 %v1104_v31  ;;  %vm928_vm13 = vmor %vm592_vm7, %vm912_vm12 }
 0x571   :  { %v3047_v47 = vpop.xlane.xlu0 %1213 }
 0x572   :  { %vm1215_vm9 = vcmp.eq.f32.partialorder %v2968_v20, %v3047_v47  ;;  %v1025_v20 = vshll.u32 %v1024_v45, 16  ;;  %v1080_v45 = vcvt.f32.s32 %v3022_v42 }
 0x573   :  { %v1216_v30 = vsel %vm1215_vm9, %v1211_v29, inf }
 0x574   :  { %1217 = vmin.xlane.f32.xlu0 %v1216_v30 }
 0x5dc   :  { %v1036_v54 = vpop.xlane.xlu1 %1035 }
 0x5dd   :  { %v1037_v7 = vcvt.f32.s32 %v1036_v54  ;;  %v3752_v54 = vld [vmem:[#allocation23_spill] sm:$0xff] }
 0x5df   :  { %v1040_v22 = vadd.s32 %v1039_v16, %v1037_v7  ;;  %v1095_v16 = vshll.u32 %v1094_v13, 16 }
 0x5e0   :  { %v1148_v17 = vpop.xlane.xlu1 %1147  ;;  %v1022_v38 = vpop.xlane.xlu0 %1021 }
 0x5e1   :  { %v1149_v26 = vcvt.f32.s32 %v1148_v17  ;;  %v1023_v12 = vcvt.f32.s32 %v1022_v38  ;;  %vm1238_vm8 = vcmp.eq.s32.totalorder %v1880_v43, %v1040_v22  ;;  %v1165_v22 = vshll.u32 %v1164_v35, 16 }
 0x5e2   :  { %v3064_v46 = vsel %vm1238_vm8, -2.0, %v2664_v48  ;;  %vm3066_vm10 = vmor %vm918_vm11, %vm1238_vm8  ;;  %v1178_v48 = vcvt.f32.s32 %v2999_v11  ;;  %v1207_v17 = vshll.u32 %v1206_v3, 16  ;;  %v3781_v3 = vmov 0 }
 0x5e3   :  { %v1152_v5 = vadd.s32 %v1151_v24, %v1149_v26  ;;  %v1026_v40 = vadd.s32 %v1025_v20, %v1023_v12  ;;  %1287 = vmax.xlane.f32.xlu1 %v3064_v46  ;;  %v1081_v20 = vshll.u32 %v1080_v45, 16  ;;  %v1122_v26 = vcvt.f32.s32 %v3030_v52  ;;  %v3766_v52 = vld [vmem:[#allocation33_spill] sm:$0xff] }
 0x5e4   :  { %v1064_v33 = vpop.xlane.xlu1 %1063  ;;  %v1134_v41 = vpop.xlane.xlu0 %1133  ;;  %v1220_v45 = vcvt.f32.s32 %v3047_v47  ;;  %v3792_v47 = vmov 0 }
 0x5e5   :  { %vm1246_vm9 = vcmp.eq.s32.totalorder %v1880_v43, %v1152_v5  ;;  %vm1237_vm11 = vcmp.eq.s32.totalorder %v1880_v43, %v1026_v40  ;;  %v1065_v10 = vcvt.f32.s32 %v1064_v33  ;;  %v1135_v4 = vcvt.f32.s32 %v1134_v41  ;;  %v3771_v41 = vld [vmem:[#allocation26_spill] sm:$0xff] }
 0x5e6   :  { %v3088_v27 = vsel %vm1246_vm9, -2.0, %v2681_v15  ;;  %vm3090_vm3 = vmor %vm926_vm2, %vm1246_vm9  ;;  %v3095_v63 = vsel %vm1237_vm11, -2.0, %v2687_v51  ;;  %v1179_v15 = vshll.u32 %v1178_v48, 16  ;;  %v1053_v51 = vshll.u32 %v1052_v19, 16 }
 0x5e7   :  { %1303 = vmax.xlane.f32.xlu1 %v3088_v27  ;;  %1285 = vmax.xlane.f32.xlu0 %v3095_v63  ;;  %vm3099_vm4 = vmor %vm917_vm0, %vm1237_vm11  ;;  %v1068_v23 = vadd.s32 %v1067_v0, %v1065_v10  ;;  %v1138_v8 = vadd.s32 %v1137_v6, %v1135_v4  ;;  %vm3753_vm0 = vcmp.eq.s32.totalorder %v1880_v43, %v3752_v54  ;;  %v1123_v10 = vshll.u32 %v1122_v26, 16 }
 0x5e8   :  { %v1176_v34 = vpop.xlane.xlu1 %1175  ;;  %vm919_vm9 = vmor %vm3753_vm0, %vm3751_vm1 }
 0x5e9   :  { %v1177_v28 = vcvt.f32.s32 %v1176_v34  ;;  %v1050_v31 = vpop.xlane.xlu0 %1049  ;;  %vm1240_vm8 = vcmp.eq.s32.totalorder %v1880_v43, %v1068_v23  ;;  %vm1245_vm2 = vcmp.eq.s32.totalorder %v1880_v43, %v1138_v8  ;;  %v1234_v23 = vcvt.f32.s32 %v3039_v53  ;;  %v3773_v34 = vld [vmem:[#allocation35_spill] sm:$0xff] }
 0x5ea   :  { %v1051_v14 = vcvt.f32.s32 %v1050_v31  ;;  %v3120_v29 = vsel %vm1240_vm8, -2.0, %v2705_v39  ;;  %vm3122_vm5 = vmor %vm920_vm14, %vm1240_vm8  ;;  %v3127_v30 = vsel %vm1245_vm2, -2.0, %v2711_v50  ;;  %v1108_v8 = vcvt.f32.s32 %v3041_v44  ;;  %v3777_v31 = vld [vmem:[#allocation36_spill] sm:$0xff]  ;;  %v3780_v44 = vld [vmem:[#allocation37_spill] sm:$0xff] }
 0x5eb   :  { %v1180_v37 = vadd.s32 %v1179_v15, %v1177_v28  ;;  %1291 = vmax.xlane.f32.xlu1 %v3120_v29  ;;  %1301 = vmax.xlane.f32.xlu0 %v3127_v30  ;;  %vm3131_vm6 = vmor %vm925_vm15, %vm1245_vm2  ;;  %vm3758_vm15 = vcmp.eq.s32.totalorder %v1880_v43, %v2738_v62  ;;  %v1192_v62 = vcvt.f32.s32 %v3032_v9  ;;  %v3767_v9 = vmov 0 }
 0x5ec   :  { %v1054_v50 = vadd.s32 %v1053_v51, %v1051_v14  ;;  %v3778_v53 = vmov 0  ;;  %v1235_v54 = vshll.u32 %v1234_v23, 16  ;;  %v3808_v23 = vld [vmem:[#allocation45_spill] sm:$0xff] }
 0x5ed   :  { %v1092_v61 = vpop.xlane.xlu1 %1091  ;;  %v1162_v32 = vpop.xlane.xlu0 %1161  ;;  %vm1248_vm11 = vcmp.eq.s32.totalorder %v1880_v43, %v1180_v37  ;;  %v1193_v4 = vshll.u32 %v1192_v62, 16 }
 0x5ee   :  { %v1093_v7 = vcvt.f32.s32 %v1092_v61  ;;  %v1163_v24 = vcvt.f32.s32 %v1162_v32  ;;  %v3151_v60 = vsel %vm1248_vm11, -2.0, %v2727_v1  ;;  %vm3153_vm7 = vmor %vm928_vm13, %vm1248_vm11  ;;  %vm1239_vm12 = vcmp.eq.s32.totalorder %v1880_v43, %v1054_v50  ;;  %v3759_v1 = vld [vmem:[#allocation24_spill] sm:$0xff]  ;;  %v3783_v50 = vld [vmem:[#allocation38_spill] sm:$0xff] }
 0x5ef   :  { %1307 = vmax.xlane.f32.xlu1 %v3151_v60  ;;  %v3160_v42 = vsel %vm1239_vm12, -2.0, %v2736_v59  ;;  %vm3162_vm14 = vmor %vm919_vm9, %vm1239_vm12  ;;  %vm3760_vm8 = vcmp.eq.s32.totalorder %v1880_v43, %v3759_v1  ;;  %vm3761_vm13 = vcmp.eq.s32.totalorder %v1880_v43, %v2740_v56  ;;  %v3762_v59 = vld [vmem:[#allocation25_spill] sm:$0xff]  ;;  %v3764_v56 = vmov 0  ;;  %v3785_v61 = vld [vmem:[#allocation28_spill] sm:$0xff] }
 0x5f0   :  { %v1096_v57 = vadd.s32 %v1095_v16, %v1093_v7  ;;  %vm922_vm2 = vmor %vm3760_vm8, %vm3758_vm15  ;;  %v1166_v38 = vadd.s32 %v1165_v22, %v1163_v24  ;;  %1289 = vmax.xlane.f32.xlu0 %v3160_v42  ;;  %vm3763_vm1 = vcmp.eq.s32.totalorder %v1880_v43, %v3762_v59  ;;  %v1109_v16 = vshll.u32 %v1108_v8, 16  ;;  %v3787_v22 = vld [vmem:[#allocation39_spill] sm:$0xff]  ;;  %v3789_v24 = vld [vmem:[#allocation29_spill] sm:$0xff] }
 0x5f1   :  { %vm927_vm0 = vmor %vm3763_vm1, %vm3761_vm13  ;;  %v1204_v12 = vpop.xlane.xlu1 %1203  ;;  %v1078_v5 = vpop.xlane.xlu0 %1077  ;;  %vm3774_vm1 = vcmp.eq.s32.totalorder %v1880_v43, %v3773_v34  ;;  %v3794_v59 = vld [vmem:[#allocation41_spill] sm:$0xff]  ;;  %v3811_v34 = vld [vmem:[#allocation46_spill] sm:$0xff] }
 0x5f2   :  { %vm1242_vm9 = vcmp.eq.s32.totalorder %v1880_v43, %v1096_v57  ;;  %v1205_v40 = vcvt.f32.s32 %v1204_v12  ;;  %v1079_v0 = vcvt.f32.s32 %v1078_v5  ;;  %vm1247_vm12 = vcmp.eq.s32.totalorder %v1880_v43, %v1166_v38  ;;  %v3797_v5 = vld [vmem:[#allocation42_spill] sm:$0xff] }
 0x5f3   :  { %v3183_v6 = vsel %vm1242_vm9, -2.0, %v2753_v55  ;;  %vm3185_vm11 = vmor %vm922_vm2, %vm1242_vm9  ;;  %v3192_v48 = vsel %vm1247_vm12, -2.0, %v3766_v52  ;;  %v3769_v55 = vld [vmem:[#allocation34_spill] sm:$0xff]  ;;  %vm3772_vm2 = vcmp.eq.s32.totalorder %v1880_v43, %v3771_v41  ;;  %v3795_v12 = vmov 0  ;;  %v3801_v52 = vld [vmem:[#allocation43_spill] sm:$0xff] }
 0x5f4   :  { %v3765_v56 = vsel %vm3185_vm11, 4294967295, %v3764_v56  ;;  %1295 = vmax.xlane.f32.xlu1 %v3183_v6  ;;  %vm3194_vm15 = vmor %vm927_vm0, %vm1247_vm12  ;;  %v1208_v19 = vadd.s32 %v1207_v17, %v1205_v40  ;;  %v1082_v33 = vadd.s32 %v1081_v20, %v1079_v0  ;;  %1305 = vmax.xlane.f32.xlu0 %v3192_v48  ;;  %vm3770_vm8 = vcmp.eq.s32.totalorder %v1880_v43, %v3769_v55  ;;  %v3791_v17 = vld [vmem:[#allocation40_spill] sm:$0xff]  ;;  %v3799_v40 = vld [vmem:[#allocation30_spill] sm:$0xff] }
 0x5f5   :  { %v3768_v9 = vsel %vm3194_vm15, 4294967295, %v3767_v9  ;;  %vm930_vm13 = vmor %vm3772_vm2, %vm3770_vm8  ;;  %v1120_v15 = vpop.xlane.xlu1 %1119  ;;  %v1190_v51 = vpop.xlane.xlu0 %1189  ;;  %vm3776_vm0 = vcmp.eq.s32.totalorder %v1880_v43, %v3775_v18  ;;  %v3805_v41 = vld [vmem:[#allocation44_spill] sm:$0xff] }
 0x5f6   :  { %vm921_vm9 = vmor %vm3776_vm0, %vm3774_vm1  ;;  %v1121_v13 = vcvt.f32.s32 %v1120_v15  ;;  %v1191_v28 = vcvt.f32.s32 %v1190_v51  ;;  %vm1250_vm12 = vcmp.eq.s32.totalorder %v1880_v43, %v1208_v19  ;;  %vm1241_vm8 = vcmp.eq.s32.totalorder %v1880_v43, %v1082_v33  ;;  %v3803_v19 = vld [vmem:[#allocation31_spill] sm:$0xff]  ;;  %v3813_v18 = vld [vmem:[#allocation32_spill] sm:$0xff] }
 0x5f7   :  { %v3216_v35 = vsel %vm1250_vm12, -2.0, %v3777_v31  ;;  %vm3218_vm2 = vmor %vm930_vm13, %vm1250_vm12  ;;  %v3223_v14 = vsel %vm1241_vm8, -2.0, %v3780_v44  ;;  %vm3784_vm0 = vcmp.eq.s32.totalorder %v1880_v43, %v3783_v50  ;;  %vm3786_vm13 = vcmp.eq.s32.totalorder %v1880_v43, %v3785_v61 }
 0x5f8   :  { %v3779_v53 = vsel %vm3218_vm2, 4294967295, %v3778_v53  ;;  %v1124_v37 = vadd.s32 %v1123_v10, %v1121_v13  ;;  %v1194_v39 = vadd.s32 %v1193_v4, %v1191_v28  ;;  %1311 = vmax.xlane.f32.xlu1 %v3216_v35  ;;  %1293 = vmax.xlane.f32.xlu0 %v3223_v14  ;;  %vm3227_vm1 = vmor %vm921_vm9, %vm1241_vm8  ;;  %vm3788_vm2 = vcmp.eq.s32.totalorder %v1880_v43, %v3787_v22  ;;  %v3815_v13 = vld [vmem:[#allocation47_spill] sm:$0xff] }
 0x5f9   :  { %v3782_v3 = vsel %vm3227_vm1, 4294967295, %v3781_v3  ;;  %vm924_vm12 = vmor %vm3786_vm13, %vm3784_vm0  ;;  %v1232_v7 = vpop.xlane.xlu1 %1231  ;;  %v1106_v32 = vpop.xlane.xlu0 %1105  ;;  %vm3790_vm9 = vcmp.eq.s32.totalorder %v1880_v43, %v3789_v24  ;;  %vm3798_vm13 = vcmp.eq.s32.totalorder %v1880_v43, %v3797_v5  ;;  %v1221_v33 = vshll.u32 %v1220_v45, 16  ;;  %v3854_v4 = vld [vmem:[#allocation19_spill] sm:$0xff] }
 0x5fa   :  { %vm929_vm8 = vmor %vm3790_vm9, %vm3788_vm2  ;;  %v1233_v57 = vcvt.f32.s32 %v1232_v7  ;;  %v1107_v1 = vcvt.f32.s32 %v1106_v32  ;;  %vm1244_vm1 = vcmp.eq.s32.totalorder %v1880_v43, %v1124_v37  ;;  %vm1249_vm15 = vcmp.eq.s32.totalorder %v1880_v43, %v1194_v39 }
 0x5fb   :  { %v3247_v38 = vsel %vm1244_vm1, -2.0, %v3791_v17  ;;  %vm3249_vm0 = vmor %vm924_vm12, %vm1244_vm1  ;;  %v3254_v20 = vsel %vm1249_vm15, -2.0, %v3794_v59  ;;  %vm3800_vm1 = vcmp.eq.s32.totalorder %v1880_v43, %v3799_v40  ;;  %vm3802_vm9 = vcmp.eq.s32.totalorder %v1880_v43, %v3801_v52 }
 0x5fc   :  { %v3793_v47 = vsel %vm3249_vm0, 4294967295, %v3792_v47  ;;  %v1236_v26 = vadd.s32 %v1235_v54, %v1233_v57  ;;  %v1110_v62 = vadd.s32 %v1109_v16, %v1107_v1  ;;  %1299 = vmax.xlane.f32.xlu1 %v3247_v38  ;;  %1309 = vmax.xlane.f32.xlu0 %v3254_v20  ;;  %vm3258_vm2 = vmor %vm929_vm8, %vm1249_vm15  ;;  %vm3804_vm0 = vcmp.eq.s32.totalorder %v1880_v43, %v3803_v19 }
 0x5fd   :  { %v3796_v12 = vsel %vm3258_vm2, 4294967295, %v3795_v12  ;;  %vm932_vm12 = vmor %vm3800_vm1, %vm3798_vm13  ;;  %v1218_v0 = vpop.xlane.xlu0 %1217  ;;  %vm3812_vm13 = vcmp.eq.s32.totalorder %v1880_v43, %v3811_v34  ;;  %vm3814_vm1 = vcmp.eq.s32.totalorder %v1880_v43, %v3813_v18 }
 0x5fe   :  { %vm923_vm11 = vmor %vm3804_vm0, %vm3802_vm9  ;;  %v1219_v55 = vcvt.f32.s32 %v1218_v0  ;;  %vm1252_vm15 = vcmp.eq.s32.totalorder %v1880_v43, %v1236_v26  ;;  %vm1243_vm8 = vcmp.eq.s32.totalorder %v1880_v43, %v1110_v62 }
 0x5ff   :  { %v3277_v10 = vsel %vm1252_vm15, -2.0, %v3805_v41  ;;  %vm3279_vm2 = vmor %vm932_vm12, %vm1252_vm15  ;;  %v3284_v8 = vsel %vm1243_vm8, -2.0, %v3808_v23 }
 0x600   :  { %v1222_v15 = vadd.s32 %v1221_v33, %v1219_v55  ;;  %1315 = vmax.xlane.f32.xlu1 %v3277_v10  ;;  %1297 = vmax.xlane.f32.xlu0 %v3284_v8  ;;  %vm3288_vm0 = vmor %vm923_vm11, %vm1243_vm8 }
 0x601   :  { %vm931_vm12 = vmor %vm3814_vm1, %vm3812_vm13 }
 0x602   :  { %vm1251_vm9 = vcmp.eq.s32.totalorder %v1880_v43, %v1222_v15 }
 0x603   :  { %v3300_v28 = vsel %vm1251_vm9, -2.0, %v3815_v13  ;;  %vm3302_vm15 = vmor %vm931_vm12, %vm1251_vm9 }
 0x604   :  { %1313 = vmax.xlane.f32.xlu0 %v3300_v28 }
 0x66c   :  { %v1288_v44 = vpop.xlane.xlu1 %1287 }
 0x66d   :  { %vm1318_vm11 = vcmp.eq.f32.partialorder %v3064_v46, %v1288_v44 }
 0x66e   :  { %v3309_v37 = vsel %vm1318_vm11, %v1880_v43, 128 }
 0x66f   :  { %v1364_v39 = vshra.s32 %v3309_v37, 16 }
 0x670   :  { %v1304_v50 = vpop.xlane.xlu1 %1303  ;;  %v1286_v61 = vpop.xlane.xlu0 %1285 }
 0x671   :  { %v3312_v54 = vcvt.s32.f32 %v1364_v39  ;;  %vm1326_vm8 = vcmp.eq.f32.partialorder %v3088_v27, %v1304_v50  ;;  %vm1317_vm13 = vcmp.eq.f32.partialorder %v3095_v63, %v1286_v61 }
 0x672   :  { %v3317_v16 = vsel %vm1326_vm8, %v1880_v43, 128  ;;  %v3320_v45 = vsel %vm1317_vm13, %v1880_v43, 128 }
 0x673   :  { %v1476_v46 = vshra.s32 %v3317_v16, 16  ;;  %v1350_v7 = vshra.s32 %v3320_v45, 16  ;;  %1367 = vmin.xlane.f32.xlu1 %v3312_v54 }
 0x674   :  { %v1292_v24 = vpop.xlane.xlu1 %1291  ;;  %v1302_v27 = vpop.xlane.xlu0 %1301 }
 0x675   :  { %v3325_v32 = vcvt.s32.f32 %v1476_v46  ;;  %v3327_v22 = vcvt.s32.f32 %v1350_v7  ;;  %vm1320_vm1 = vcmp.eq.f32.partialorder %v3120_v29, %v1292_v24  ;;  %vm1325_vm12 = vcmp.eq.f32.partialorder %v3127_v30, %v1302_v27 }
 0x676   :  { %v3332_v63 = vsel %vm1320_vm1, %v1880_v43, 128  ;;  %v3335_v57 = vsel %vm1325_vm12, %v1880_v43, 128 }
 0x677   :  { %1479 = vmin.xlane.f32.xlu1 %v3325_v32  ;;  %1353 = vmin.xlane.f32.xlu0 %v3327_v22  ;;  %v1392_v1 = vshra.s32 %v3332_v63, 16  ;;  %v1462_v17 = vshra.s32 %v3335_v57, 16 }
 0x678   :  { %v1308_v59 = vpop.xlane.xlu1 %1307 }
 0x679   :  { %v3341_v26 = vcvt.s32.f32 %v1392_v1  ;;  %v3343_v29 = vcvt.s32.f32 %v1462_v17  ;;  %v1290_v30 = vpop.xlane.xlu0 %1289  ;;  %vm1328_vm9 = vcmp.eq.f32.partialorder %v3151_v60, %v1308_v59 }
 0x67a   :  { %vm1319_vm11 = vcmp.eq.f32.partialorder %v3160_v42, %v1290_v30  ;;  %v3348_v62 = vsel %vm1328_vm9, %v1880_v43, 128 }
 0x67b   :  { %v3351_v5 = vsel %vm1319_vm11, %v1880_v43, 128  ;;  %1395 = vmin.xlane.f32.xlu1 %v3341_v26  ;;  %1465 = vmin.xlane.f32.xlu0 %v3343_v29  ;;  %v1504_v40 = vshra.s32 %v3348_v62, 16 }
 0x67c   :  { %v1378_v0 = vshra.s32 %v3351_v5, 16 }
 0x67d   :  { %v1296_v52 = vpop.xlane.xlu1 %1295  ;;  %v1306_v60 = vpop.xlane.xlu0 %1305  ;;  %v3358_v19 = vcvt.s32.f32 %v1504_v40 }
 0x67e   :  { %vm1322_vm8 = vcmp.eq.f32.partialorder %v3183_v6, %v1296_v52  ;;  %v3360_v42 = vcvt.s32.f32 %v1378_v0  ;;  %vm1327_vm13 = vcmp.eq.f32.partialorder %v3192_v48, %v1306_v60 }
 0x67f   :  { %v3363_v33 = vsel %vm1322_vm8, %v1880_v43, 128  ;;  %v3368_v41 = vsel %vm1327_vm13, %v1880_v43, 128  ;;  %1507 = vmin.xlane.f32.xlu1 %v3358_v19 }
 0x680   :  { %v1420_v55 = vshra.s32 %v3363_v33, 16  ;;  %1381 = vmin.xlane.f32.xlu0 %v3360_v42  ;;  %v1490_v6 = vshra.s32 %v3368_v41, 16 }
 0x681   :  { %v1312_v23 = vpop.xlane.xlu1 %1311  ;;  %v1294_v15 = vpop.xlane.xlu0 %1293 }
 0x682   :  { %v3373_v34 = vcvt.s32.f32 %v1420_v55  ;;  %vm1330_vm1 = vcmp.eq.f32.partialorder %v3216_v35, %v1312_v23  ;;  %vm1321_vm12 = vcmp.eq.f32.partialorder %v3223_v14, %v1294_v15  ;;  %v3377_v48 = vcvt.s32.f32 %v1490_v6 }
 0x683   :  { %v3380_v18 = vsel %vm1330_vm1, %v1880_v43, 128  ;;  %v3383_v13 = vsel %vm1321_vm12, %v1880_v43, 128  ;;  %v1363_v23 = vand.u32 65535, %v3309_v37  ;;  %v1475_v15 = vand.u32 65535, %v3317_v16 }
 0x684   :  { %v1532_v44 = vshra.s32 %v3380_v18, 16  ;;  %v1406_v39 = vshra.s32 %v3383_v13, 16  ;;  %1423 = vmin.xlane.f32.xlu1 %v3373_v34  ;;  %1493 = vmin.xlane.f32.xlu0 %v3377_v48  ;;  %v1391_v37 = vand.u32 65535, %v3332_v63  ;;  %v1503_v63 = vand.u32 65535, %v3348_v62 }
 0x685   :  { %v1300_v50 = vpop.xlane.xlu1 %1299  ;;  %v1310_v35 = vpop.xlane.xlu0 %1309  ;;  %v1489_v62 = vand.u32 65535, %v3368_v41 }
 0x686   :  { %v3389_v61 = vcvt.s32.f32 %v1532_v44  ;;  %v3391_v14 = vcvt.s32.f32 %v1406_v39  ;;  %vm1324_vm9 = vcmp.eq.f32.partialorder %v3247_v38, %v1300_v50  ;;  %vm1329_vm11 = vcmp.eq.f32.partialorder %v3254_v20, %v1310_v35 }
 0x687   :  { %v3396_v46 = vsel %vm1324_vm9, %v1880_v43, 128  ;;  %v3399_v7 = vsel %vm1329_vm11, %v1880_v43, 128  ;;  %v1349_v44 = vand.u32 65535, %v3320_v45  ;;  %v1477_v35 = vcvt.s32.f32 %v1475_v15 }
 0x688   :  { %1535 = vmin.xlane.f32.xlu1 %v3389_v61  ;;  %v1448_v24 = vshra.s32 %v3396_v46, 16  ;;  %v1518_v27 = vshra.s32 %v3399_v7, 16  ;;  %1409 = vmin.xlane.f32.xlu0 %v3391_v14  ;;  %v1393_v45 = vcvt.s32.f32 %v1391_v37 }
 0x689   :  { %v1316_v1 = vpop.xlane.xlu1 %1315  ;;  %v1298_v17 = vpop.xlane.xlu0 %1297 }
 0x68a   :  { %vm1332_vm8 = vcmp.eq.f32.partialorder %v3277_v10, %v1316_v1  ;;  %vm1323_vm13 = vcmp.eq.f32.partialorder %v3284_v8, %v1298_v17  ;;  %v3407_v38 = vcvt.s32.f32 %v1448_v24  ;;  %v3409_v20 = vcvt.s32.f32 %v1518_v27 }
 0x68b   :  { %v3412_v59 = vsel %vm1332_vm8, %v1880_v43, 128  ;;  %v3415_v30 = vsel %vm1323_vm13, %v1880_v43, 128  ;;  %v1351_v24 = vcvt.s32.f32 %v1349_v44  ;;  %v1461_v17 = vand.u32 65535, %v3335_v57 }
 0x68c   :  { %v1560_v40 = vshra.s32 %v3412_v59, 16  ;;  %v1434_v0 = vshra.s32 %v3415_v30, 16  ;;  %1451 = vmin.xlane.f32.xlu1 %v3407_v38  ;;  %1521 = vmin.xlane.f32.xlu0 %v3409_v20  ;;  %v1377_v57 = vand.u32 65535, %v3351_v5 }
 0x68d   :  { %v1314_v10 = vpop.xlane.xlu0 %1313 }
 0x68e   :  { %vm1331_vm1 = vcmp.eq.f32.partialorder %v3300_v28, %v1314_v10  ;;  %v3422_v8 = vcvt.s32.f32 %v1560_v40  ;;  %v3424_v52 = vcvt.s32.f32 %v1434_v0  ;;  %v1365_v28 = vcvt.s32.f32 %v1363_v23 }
 0x68f   :  { %v3427_v60 = vsel %vm1331_vm1, %v1880_v43, 128  ;;  %v1463_v40 = vcvt.s32.f32 %v1461_v17  ;;  %v1379_v23 = vcvt.s32.f32 %v1377_v57 }
 0x690   :  { %v1546_v55 = vshra.s32 %v3427_v60, 16  ;;  %1563 = vmin.xlane.f32.xlu1 %v3422_v8  ;;  %1437 = vmin.xlane.f32.xlu0 %v3424_v52 }
 0x692   :  { %v3432_v6 = vcvt.s32.f32 %v1546_v55  ;;  %v1505_v55 = vcvt.s32.f32 %v1503_v63  ;;  %v1559_v63 = vand.u32 65535, %v3412_v59  ;;  %v1545_v59 = vand.u32 65535, %v3427_v60 }
 0x694   :  { %1549 = vmin.xlane.f32.xlu0 %v3432_v6 }
 0x6fc   :  { %v3438_v39 = vpop.xlane.xlu1 %1367 }
 0x6fd   :  { %vm1369_vm12 = vcmp.eq.f32.partialorder %v3312_v54, %v3438_v39 }
 0x6fe   :  { %v1370_v50 = vsel %vm1369_vm12, %v1365_v28, inf  ;;  %v1419_v28 = vand.u32 65535, %v3363_v33 }
 0x6ff   :  { %1371 = vmin.xlane.f32.xlu1 %v1370_v50  ;;  %v1531_v50 = vand.u32 65535, %v3380_v18 }
 0x700   :  { %v3442_v27 = vpop.xlane.xlu1 %1479  ;;  %v3444_v1 = vpop.xlane.xlu0 %1353  ;;  %v1421_v5 = vcvt.s32.f32 %v1419_v28 }
 0x701   :  { %vm1481_vm9 = vcmp.eq.f32.partialorder %v3325_v32, %v3442_v27  ;;  %vm1355_vm11 = vcmp.eq.f32.partialorder %v3327_v22, %v3444_v1  ;;  %v1533_v37 = vcvt.s32.f32 %v1531_v50 }
 0x702   :  { %v1482_v16 = vsel %vm1481_vm9, %v1477_v35, inf  ;;  %v1356_v54 = vsel %vm1355_vm11, %v1351_v24, inf  ;;  %v1491_v35 = vcvt.s32.f32 %v1489_v62  ;;  %v1405_v24 = vand.u32 65535, %v3383_v13 }
 0x703   :  { %1483 = vmin.xlane.f32.xlu1 %v1482_v16  ;;  %1357 = vmin.xlane.f32.xlu0 %v1356_v54  ;;  %v1447_v16 = vand.u32 65535, %v3396_v46  ;;  %v1517_v13 = vand.u32 65535, %v3399_v7  ;;  %v1433_v46 = vand.u32 65535, %v3415_v30  ;;  %v1374_v62 = vcvt.f32.s32 %v3438_v39 }
 0x704   :  { %v3452_v0 = vpop.xlane.xlu1 %1395  ;;  %v3454_v10 = vpop.xlane.xlu0 %1465  ;;  %v1407_v18 = vcvt.s32.f32 %v1405_v24 }
 0x705   :  { %vm1397_vm8 = vcmp.eq.f32.partialorder %v3341_v26, %v3452_v0  ;;  %vm1467_vm13 = vcmp.eq.f32.partialorder %v3343_v29, %v3454_v10  ;;  %v1472_v39 = vcvt.f32.s32 %v3454_v10 }
 0x706   :  { %v1398_v32 = vsel %vm1397_vm8, %v1393_v45, inf  ;;  %v1468_v22 = vsel %vm1467_vm13, %v1463_v40, inf  ;;  %v1449_v45 = vcvt.s32.f32 %v1447_v16  ;;  %v1519_v40 = vcvt.s32.f32 %v1517_v13 }
 0x707   :  { %1399 = vmin.xlane.f32.xlu1 %v1398_v32  ;;  %1469 = vmin.xlane.f32.xlu0 %v1468_v22  ;;  %v1561_v32 = vcvt.s32.f32 %v1559_v63  ;;  %v1435_v22 = vcvt.s32.f32 %v1433_v46  ;;  %v1473_v63 = vshll.u32 %v1472_v39, 16 }
 0x708   :  { %v3463_v15 = vpop.xlane.xlu1 %1507 }
 0x709   :  { %v3465_v44 = vpop.xlane.xlu0 %1381  ;;  %vm1509_vm1 = vcmp.eq.f32.partialorder %v3358_v19, %v3463_v15  ;;  %v1514_v10 = vcvt.f32.s32 %v3463_v15 }
 0x70a   :  { %vm1383_vm12 = vcmp.eq.f32.partialorder %v3360_v42, %v3465_v44  ;;  %v1510_v26 = vsel %vm1509_vm1, %v1505_v55, inf  ;;  %v1388_v46 = vcvt.f32.s32 %v3465_v44 }
 0x70b   :  { %v1384_v29 = vsel %vm1383_vm12, %v1379_v23, inf  ;;  %1511 = vmin.xlane.f32.xlu1 %v1510_v26  ;;  %v1547_v23 = vcvt.s32.f32 %v1545_v59  ;;  %v1486_v26 = vcvt.f32.s32 %v3442_v27  ;;  %v3818_v27 = vld [vmem:[#allocation5_spill] sm:$0xff] }
 0x70c   :  { %1385 = vmin.xlane.f32.xlu0 %v1384_v29  ;;  %v1375_v29 = vshll.u32 %v1374_v62, 16  ;;  %v3819_v16 = vmax.f32 %v3818_v27, 0.0  ;;  %v1389_v62 = vshll.u32 %v1388_v46, 16  ;;  %v3828_v27 = vld [vmem:[#allocation10_spill] sm:$0xff] }
 0x70d   :  { %v3473_v33 = vpop.xlane.xlu1 %1423  ;;  %v3478_v41 = vpop.xlane.xlu0 %1493  ;;  %v3833_v46 = vld [vmem:[#allocation14_spill] sm:$0xff] }
 0x70e   :  { %vm1425_vm9 = vcmp.eq.f32.partialorder %v3373_v34, %v3473_v33  ;;  %vm1495_vm11 = vcmp.eq.f32.partialorder %v3377_v48, %v3478_v41  ;;  %v1430_v25 = vcvt.f32.s32 %v3473_v33  ;;  %v3826_v33 = vld [vmem:[#allocation8_spill] sm:$0xff] }
 0x70f   :  { %v1426_v19 = vsel %vm1425_vm9, %v1421_v5, inf  ;;  %v1496_v42 = vsel %vm1495_vm11, %v1491_v35, inf  ;;  %v1487_v35 = vshll.u32 %v1486_v26, 16 }
 0x710   :  { %1427 = vmin.xlane.f32.xlu1 %v1426_v19  ;;  %1497 = vmin.xlane.f32.xlu0 %v1496_v42 }
 0x711   :  { %v3482_v17 = vpop.xlane.xlu1 %1535  ;;  %v3488_v34 = vpop.xlane.xlu0 %1409 }
 0x712   :  { %vm1537_vm8 = vcmp.eq.f32.partialorder %v3389_v61, %v3482_v17  ;;  %vm1411_vm13 = vcmp.eq.f32.partialorder %v3391_v14, %v3488_v34  ;;  %v1416_v36 = vcvt.f32.s32 %v3488_v34 }
 0x713   :  { %v1538_v48 = vsel %vm1537_vm8, %v1533_v37, inf  ;;  %v1412_v54 = vsel %vm1411_vm13, %v1407_v18, inf  ;;  %v1402_v18 = vcvt.f32.s32 %v3452_v0 }
 0x714   :  { %1539 = vmin.xlane.f32.xlu1 %v1538_v48  ;;  %1413 = vmin.xlane.f32.xlu0 %v1412_v54 }
 0x715   :  { %v3494_v57 = vpop.xlane.xlu1 %1451  ;;  %v3496_v7 = vpop.xlane.xlu0 %1521 }
 0x716   :  { %vm1453_vm1 = vcmp.eq.f32.partialorder %v3407_v38, %v3494_v57  ;;  %vm1523_vm12 = vcmp.eq.f32.partialorder %v3409_v20, %v3496_v7  ;;  %v1458_v34 = vcvt.f32.s32 %v3494_v57 }
 0x717   :  { %v1454_v61 = vsel %vm1453_vm1, %v1449_v45, inf  ;;  %v1524_v14 = vsel %vm1523_vm12, %v1519_v40, inf  ;;  %v1403_v40 = vshll.u32 %v1402_v18, 16 }
 0x718   :  { %1455 = vmin.xlane.f32.xlu1 %v1454_v61  ;;  %1525 = vmin.xlane.f32.xlu0 %v1524_v14  ;;  %v3820_v61 = vld [vmem:[#allocation6_spill] sm:$0xff] }
 0x719   :  { %v3503_v55 = vpop.xlane.xlu1 %1563  ;;  %v3505_v30 = vpop.xlane.xlu0 %1437  ;;  %v3821_v14 = vmax.f32 %v3820_v61, 0.0  ;;  %v3834_v61 = vmax.f32 %v3833_v46, 0.0 }
 0x71a   :  { %vm1565_vm9 = vcmp.eq.f32.partialorder %v3422_v8, %v3503_v55  ;;  %vm1439_vm11 = vcmp.eq.f32.partialorder %v3424_v52, %v3505_v30  ;;  %v1360_v52 = vcvt.f32.s32 %v3444_v1 }
 0x71b   :  { %v1566_v38 = vsel %vm1565_vm9, %v1561_v32, inf  ;;  %v1440_v20 = vsel %vm1439_vm11, %v1435_v22, inf  ;;  %v3822_v22 = vld [vmem:[#allocation7_spill] sm:$0xff] }
 0x71c   :  { %1567 = vmin.xlane.f32.xlu1 %v1566_v38  ;;  %1441 = vmin.xlane.f32.xlu0 %v1440_v20  ;;  %v1361_v42 = vshll.u32 %v1360_v52, 16  ;;  %v3823_v59 = vmax.f32 %v3822_v22, 0.0 }
 0x71d   :  { %v3511_v28 = vpop.xlane.xlu0 %1549 }
 0x71e   :  { %vm1551_vm8 = vcmp.eq.f32.partialorder %v3432_v6, %v3511_v28 }
 0x71f   :  { %v1552_v60 = vsel %vm1551_vm8, %v1547_v23, inf }
 0x720   :  { %1553 = vmin.xlane.f32.xlu0 %v1552_v60  ;;  %v1515_v60 = vshll.u32 %v1514_v10, 16  ;;  %v1528_v10 = vcvt.f32.s32 %v3496_v7  ;;  %v1570_v7 = vcvt.f32.s32 %v3503_v55  ;;  %v3842_v55 = vld [vmem:[#allocation13_spill] sm:$0xff] }
 0x788   :  { %v1372_v8 = vpop.xlane.xlu1 %1371 }
 0x789   :  { %v1373_v5 = vcvt.f32.s32 %v1372_v8  ;;  %v1500_v8 = vcvt.f32.s32 %v3478_v41 }
 0x78b   :  { %v1376_v50 = vadd.s32 %v1375_v29, %v1373_v5  ;;  %v3824_v29 = vld [vmem:[#allocation9_spill] sm:$0xff]  ;;  %v1501_v18 = vshll.u32 %v1500_v8, 16 }
 0x78c   :  { %v1484_v24 = vpop.xlane.xlu1 %1483  ;;  %v1358_v19 = vpop.xlane.xlu0 %1357  ;;  %v3825_v52 = vmax.f32 %v3824_v29, 0.0 }
 0x78d   :  { %vm1574_vm13 = vcmp.eq.s32.totalorder %v1880_v43, %v1376_v50  ;;  %v1485_v37 = vcvt.f32.s32 %v1484_v24  ;;  %v1359_v6 = vcvt.f32.s32 %v1358_v19  ;;  %v3827_v50 = vmax.f32 %v3826_v33, 0.0 }
 0x78e   :  { %vm1590_vm1 = vmor %vm3066_vm10, %vm1574_vm13 }
 0x78f   :  { %v1606_v1 = vsel %vm1590_vm1, %v3819_v16, 0.0  ;;  %v1488_v13 = vadd.s32 %v1487_v35, %v1485_v37  ;;  %v1362_v48 = vadd.s32 %v1361_v42, %v1359_v6  ;;  %v1431_v42 = vshll.u32 %v1430_v25, 16 }
 0x790   :  { %1622 = vst [vmem:[#allocation2 + $0x8] sm:$0xff] %v1606_v1  ;;  %v1400_v54 = vpop.xlane.xlu1 %1399  ;;  %v1470_v45 = vpop.xlane.xlu0 %1469  ;;  %v1542_v37 = vcvt.f32.s32 %v3482_v17  ;;  %v3829_v16 = vmax.f32 %v3828_v27, 0.0 }
 0x791   :  { %vm1582_vm12 = vcmp.eq.s32.totalorder %v1880_v43, %v1488_v13  ;;  %vm1573_vm9 = vcmp.eq.s32.totalorder %v1880_v43, %v1362_v48  ;;  %v1401_v0 = vcvt.f32.s32 %v1400_v54  ;;  %v1471_v2 = vcvt.f32.s32 %v1470_v45  ;;  %v3830_v13 = vld [vmem:[#allocation12_spill] sm:$0xff] }
 0x792   :  { %vm1598_vm11 = vmor %vm3090_vm3, %vm1582_vm12  ;;  %v3831_v48 = vmax.f32 %v3830_v13, 0.0 }
 0x793   :  { %v1614_v32 = vsel %vm1598_vm11, %v3821_v14, 0.0  ;;  %vm1589_vm10 = vmor %vm3099_vm4, %vm1573_vm9  ;;  %v1404_v20 = vadd.s32 %v1403_v40, %v1401_v0  ;;  %v1474_v23 = vadd.s32 %v1473_v63, %v1471_v2  ;;  %v1543_v63 = vshll.u32 %v1542_v37, 16  ;;  %v3848_v37 = vld [vmem:[#allocation15_spill] sm:$0xff] }
 0x794   :  { %1630 = vst [vmem:[#allocation2 + $0x48] sm:$0xff] %v1614_v32  ;;  %v1605_v38 = vsel %vm1589_vm10, %v3823_v59, 0.0  ;;  %v1512_v15 = vpop.xlane.xlu1 %1511  ;;  %v1417_v2 = vshll.u32 %v1416_v36, 16  ;;  %vm3835_vm10 = vnez %v3768_v9  ;;  %v3836_v32 = vld [vmem:[#allocation11_spill] sm:$0xff] }
 0x795   :  { %1621 = vst [vmem:[#allocation2] sm:$0xff] %v1605_v38  ;;  %vm1576_vm3 = vcmp.eq.s32.totalorder %v1880_v43, %v1404_v20  ;;  %vm1581_vm8 = vcmp.eq.s32.totalorder %v1880_v43, %v1474_v23  ;;  %v1386_v44 = vpop.xlane.xlu0 %1385  ;;  %v1513_v11 = vcvt.f32.s32 %v1512_v15  ;;  %v3837_v22 = vmax.f32 %v3836_v32, 0.0 }
 0x796   :  { %vm1592_vm4 = vmor %vm3122_vm5, %vm1576_vm3  ;;  %v1387_v26 = vcvt.f32.s32 %v1386_v44  ;;  %v1459_v20 = vshll.u32 %v1458_v34, 16  ;;  %v1529_v15 = vshll.u32 %v1528_v10, 16 }
 0x797   :  { %v1608_v5 = vsel %vm1592_vm4, %v3825_v52, 0.0  ;;  %vm1597_vm13 = vmor %vm3131_vm6, %vm1581_vm8  ;;  %v1516_v24 = vadd.s32 %v1515_v60, %v1513_v11  ;;  %vm3838_vm4 = vnez %v3779_v53  ;;  %v3839_v60 = vld [vmem:[#allocation16_spill] sm:$0xff]  ;;  %v1571_v52 = vshll.u32 %v1570_v7, 16 }
 0x798   :  { %1624 = vst [vmem:[#allocation2 + $0x18] sm:$0xff] %v1608_v5  ;;  %v1613_v35 = vsel %vm1597_vm13, %v3827_v50, 0.0  ;;  %v1390_v19 = vadd.s32 %v1389_v62, %v1387_v26  ;;  %v3840_v62 = vmax.f32 %v3839_v60, 0.0  ;;  %v1556_v53 = vcvt.f32.s32 %v3511_v28 }
 0x799   :  { %1629 = vst [vmem:[#allocation2 + $0x40] sm:$0xff] %v1613_v35  ;;  %v1428_v49 = vpop.xlane.xlu1 %1427  ;;  %vm1584_vm5 = vcmp.eq.s32.totalorder %v1880_v43, %v1516_v24  ;;  %v1498_v6 = vpop.xlane.xlu0 %1497  ;;  %v3845_v24 = vld [vmem:[#allocation18_spill] sm:$0xff] }
 0x79a   :  { %vm1575_vm1 = vcmp.eq.s32.totalorder %v1880_v43, %v1390_v19  ;;  %v1429_v41 = vcvt.f32.s32 %v1428_v49  ;;  %vm1600_vm6 = vmor %vm3153_vm7, %vm1584_vm5  ;;  %v1499_v39 = vcvt.f32.s32 %v1498_v6  ;;  %v3846_v19 = vmax.f32 %v3845_v24, 0.0 }
 0x79b   :  { %v1616_v1 = vsel %vm1600_vm6, %v3829_v16, 0.0  ;;  %vm1591_vm12 = vmor %vm3162_vm14, %vm1575_vm1  ;;  %vm3832_vm14 = vnez %v3765_v56  ;;  %v1444_v56 = vcvt.f32.s32 %v3505_v30  ;;  %vm3841_vm1 = vnez %v3782_v3 }
 0x79c   :  { %v1432_v17 = vadd.s32 %v1431_v42, %v1429_v41  ;;  %1632 = vst [vmem:[#allocation2 + $0x58] sm:$0xff] %v1616_v1  ;;  %v1607_v54 = vsel %vm1591_vm12, %v3831_v48, 0.0  ;;  %v1502_v45 = vadd.s32 %v1501_v18, %v1499_v39  ;;  %v3843_v30 = vmax.f32 %v3842_v55, 0.0  ;;  %v3850_v39 = vld [vmem:[#allocation20_spill] sm:$0xff]  ;;  %v3852_v1 = vld [vmem:[#allocation17_spill] sm:$0xff] }
 0x79d   :  { %v1540_v40 = vpop.xlane.xlu1 %1539  ;;  %1623 = vst [vmem:[#allocation2 + $0x10] sm:$0xff] %v1607_v54  ;;  %v1414_v0 = vpop.xlane.xlu0 %1413  ;;  %v1445_v5 = vshll.u32 %v1444_v56, 16  ;;  %v3849_v41 = vmax.f32 %v3848_v37, 0.0  ;;  %v1557_v36 = vshll.u32 %v1556_v53, 16  ;;  %v3855_v48 = vmax.f32 %v3854_v4, 0.0 }
 0x79e   :  { %vm1578_vm7 = vcmp.eq.s32.totalorder %v1880_v43, %v1432_v17  ;;  %v1541_v21 = vcvt.f32.s32 %v1540_v40  ;;  %vm1583_vm11 = vcmp.eq.s32.totalorder %v1880_v43, %v1502_v45  ;;  %v1415_v58 = vcvt.f32.s32 %v1414_v0 }
 0x79f   :  { %vm1594_vm9 = vmor %vm3832_vm14, %vm1578_vm7  ;;  %vm3844_vm14 = vnez %v3793_v47  ;;  %v3853_v17 = vmax.f32 %v3852_v1, 0.0 }
 0x7a0   :  { %v1610_v14 = vsel %vm1594_vm9, %v3834_v61, 0.0  ;;  %vm1599_vm3 = vmor %vm3835_vm10, %vm1583_vm11  ;;  %v1544_v57 = vadd.s32 %v1543_v63, %v1541_v21  ;;  %v1418_v38 = vadd.s32 %v1417_v2, %v1415_v58  ;;  %vm3847_vm11 = vnez %v3796_v12 }
 0x7a1   :  { %1626 = vst [vmem:[#allocation2 + $0x28] sm:$0xff] %v1610_v14  ;;  %v1615_v59 = vsel %vm1599_vm3, %v3837_v22, 0.0  ;;  %v1456_v23 = vpop.xlane.xlu1 %1455  ;;  %v1526_v25 = vpop.xlane.xlu0 %1525  ;;  %v3851_v12 = vmax.f32 %v3850_v39, 0.0 }
 0x7a2   :  { %1631 = vst [vmem:[#allocation2 + $0x50] sm:$0xff] %v1615_v59  ;;  %vm1586_vm8 = vcmp.eq.s32.totalorder %v1880_v43, %v1544_v57  ;;  %vm1577_vm5 = vcmp.eq.s32.totalorder %v1880_v43, %v1418_v38  ;;  %v1457_v9 = vcvt.f32.s32 %v1456_v23  ;;  %v1527_v44 = vcvt.f32.s32 %v1526_v25 }
 0x7a3   :  { %vm1602_vm13 = vmor %vm3838_vm4, %vm1586_vm8 }
 0x7a4   :  { %v1618_v11 = vsel %vm1602_vm13, %v3840_v62, 0.0  ;;  %vm1593_vm6 = vmor %vm3841_vm1, %vm1577_vm5  ;;  %v1460_v8 = vadd.s32 %v1459_v20, %v1457_v9  ;;  %v1530_v29 = vadd.s32 %v1529_v15, %v1527_v44 }
 0x7a5   :  { %1634 = vst [vmem:[#allocation2 + $0x68] sm:$0xff] %v1618_v11  ;;  %v1609_v26 = vsel %vm1593_vm6, %v3843_v30, 0.0  ;;  %v1568_v33 = vpop.xlane.xlu1 %1567  ;;  %v1442_v50 = vpop.xlane.xlu0 %1441 }
 0x7a6   :  { %1625 = vst [vmem:[#allocation2 + $0x20] sm:$0xff] %v1609_v26  ;;  %vm1580_vm12 = vcmp.eq.s32.totalorder %v1880_v43, %v1460_v8  ;;  %vm1585_vm7 = vcmp.eq.s32.totalorder %v1880_v43, %v1530_v29  ;;  %v1569_v35 = vcvt.f32.s32 %v1568_v33  ;;  %v1443_v3 = vcvt.f32.s32 %v1442_v50 }
 0x7a7   :  { %vm1596_vm9 = vmor %vm3844_vm14, %vm1580_vm12 }
 0x7a8   :  { %v1612_v42 = vsel %vm1596_vm9, %v3846_v19, 0.0  ;;  %vm1601_vm10 = vmor %vm3847_vm11, %vm1585_vm7  ;;  %v1572_v49 = vadd.s32 %v1571_v52, %v1569_v35  ;;  %v1446_v28 = vadd.s32 %v1445_v5, %v1443_v3 }
 0x7a9   :  { %1628 = vst [vmem:[#allocation2 + $0x38] sm:$0xff] %v1612_v42  ;;  %v1617_v6 = vsel %vm1601_vm10, %v3849_v41, 0.0  ;;  %v1554_v18 = vpop.xlane.xlu0 %1553 }
 0x7aa   :  { %1633 = vst [vmem:[#allocation2 + $0x60] sm:$0xff] %v1617_v6  ;;  %vm1588_vm3 = vcmp.eq.s32.totalorder %v1880_v43, %v1572_v49  ;;  %vm1579_vm8 = vcmp.eq.s32.totalorder %v1880_v43, %v1446_v28  ;;  %v1555_v47 = vcvt.f32.s32 %v1554_v18 }
 0x7ab   :  { %vm1604_vm4 = vmor %vm3279_vm2, %vm1588_vm3 }
 0x7ac   :  { %v1620_v27 = vsel %vm1604_vm4, %v3851_v12, 0.0  ;;  %vm1595_vm13 = vmor %vm3288_vm0, %vm1579_vm8  ;;  %v1558_v16 = vadd.s32 %v1557_v36, %v1555_v47 }
 0x7ad   :  { %1636 = vst [vmem:[#allocation2 + $0x78] sm:$0xff] %v1620_v27  ;;  %v1611_v13 = vsel %vm1595_vm13, %v3853_v17, 0.0 }
 0x7ae   :  { %1627 = vst [vmem:[#allocation2 + $0x30] sm:$0xff] %v1611_v13  ;;  %vm1587_vm5 = vcmp.eq.s32.totalorder %v1880_v43, %v1558_v16 }
 0x7af   :  { %vm1603_vm1 = vmor %vm3302_vm15, %vm1587_vm5 }
 0x7b0   :  { %v1619_v54 = vsel %vm1603_vm1, %v3855_v48, 0.0 }
 0x7b1   :  { %1635 = vst [vmem:[#allocation2 + $0x70] sm:$0xff] %v1619_v54 }
 0x7b2   :  { %1775 = shalt.err (!%p1772_p4)
}
 0x7b3   :  { %s1787_s22 = smov 128   ;;  %s1788_s1 = smov 8  }
 0x7b4   :  { %1648 = dma.vmem_to_hbm [thread:$0]  %s1643_s20, 2048, %s3616_s2, [#allocation3], %s1787_s22, %s1787_s22, %s1788_s1  }
 0x7b5   :  { %1784 = dma.done.wait [#allocation3], 2048  }
 0x7b6   :  { %1785 = vsyncadd [#allocation3], 4294965248 }
 0x7b7   :  { %1652 = vsyncpa [#allocation3], 1 }

</bundles_post_ra>
